<compile_context>
chip_gen: v7x
topology: tpu7x:2x2x1
jax: 0.10.0
libtpu: 0.0.40
codegen_flags: <defaults>
</compile_context>

<pallas_src>
import math
from functools import partial

import jax
import jax.numpy as jnp
from jax.experimental import pallas as pl
from jax.experimental.pallas import tpu as pltpu


def _round_up(x, m):
    return ((x + m - 1) // m) * m


def _pair_to_msa_kernel(attn_ref, msa_ref, wv_ref, out_ref, *, n_head, compute_dtype):
    """One (batch, R-tile) grid step.  Pure MXU work: the softmax is precomputed.

    attn_ref: (H, L, L)      row-softmaxed pairwise attention (softmax axis on lanes)
    msa_ref : (TR, L, Din)
    wv_ref  : (Din, Dout)
    out_ref : (H, L, TR*Dh)  head-major output slabs (re-interleaved by the wrapper)
    """
    H = n_head
    TR, L, Din = msa_ref.shape
    Dout = wv_ref.shape[-1]
    Dh = Dout // H

    msa = msa_ref[...].astype(compute_dtype)          # (TR, L, Din)
    wv = wv_ref[...].astype(compute_dtype)            # (Din, Dout)

    # V projection: one lane-dense MXU matmul with f32 accumulation.
    v = jnp.dot(msa.reshape(TR * L, Din), wv,
                preferred_element_type=jnp.float32)    # (TR*L, Dout)

    # ONE bulk relayout instead of O(H*TR) sub-vreg slices/concats:
    # (TR, L, H, Dh) -> (H, L, TR, Dh) -> (H, L, TR*Dh); column order within a head is
    # (r, d), undone cheaply by the wrapper.
    v = v.astype(compute_dtype).reshape(TR, L, H, Dh)
    v_perm = jnp.transpose(v, (2, 1, 0, 3)).reshape(H, L, TR * Dh)

    # Attention-apply: per head one (L, L) @ (L, TR*Dh) MXU matmul, stored directly as a
    # lane-dense slab (no stack/concat epilogue; only one head's result stays live).
    for h in range(H):                                 # static, small head count
        attn_h = attn_ref[h].astype(compute_dtype)     # (L, L)
        res = jnp.dot(attn_h, v_perm[h],
                      preferred_element_type=jnp.float32)   # (L, TR*Dh)
        out_ref[h] = res.astype(out_ref.dtype)


def _block_vmem_bytes(H, L, TR, Din, Dout, Dh, in_itemsize, compute_itemsize):
    """Estimate of the per-step VMEM working set (lane/sublane padded, 2x buffered)."""
    def padded(rows, cols, itemsize):
        return _round_up(max(rows, 1), 8) * _round_up(max(cols, 1), 128) * itemsize

    attn_blk = H * padded(L, L, in_itemsize)
    msa_blk = TR * padded(L, Din, in_itemsize)
    out_blk = H * padded(L, TR * Dh, in_itemsize)
    wv_blk = padded(Din, Dout, in_itemsize)
    streamed = 2 * (attn_blk + msa_blk + out_blk + wv_blk)       # double-buffering
    inter = (TR * padded(L, Dout, 4)                              # f32 V accumulator
             + TR * padded(L, Dout, compute_itemsize)             # relayouted V copy
             + padded(L, TR * Dh, 4))                             # one head's f32 result
    return streamed + inter


def pair_to_msa(msa_emb, pair_feat, w1t, wv, *, n_head, scaling=1.0,
                seqlen_scaling=True, attn_mask=None, r_block=None,
                prefer_bf16_matmul=False):
    """Pallas implementation of Pair_to_MSA.forward.

    msa_emb  : (N, R, L, Din)
    pair_feat: (N, L, L, E2)
    w1t      : (H, E2)      -- linear_layer.weight (PyTorch layout, y = x @ W^T)
    wv       : (Din, Dout)  -- to_v.weight^T
    attn_mask: optional (N, L) 0/1 mask, applied before the softmax like the module.
    """
    N, R, L, Din = msa_emb.shape
    Dout = wv.shape[1]
    H = n_head
    assert Dout % H == 0
    Dh = Dout // H
    dt = msa_emb.dtype
    scale = scaling / math.sqrt(L) if seqlen_scaling else scaling

    compute_dtype = jnp.bfloat16 if (prefer_bf16_matmul or dt == jnp.bfloat16) else dt

    # ---- Softmax hoisted into the wrapper: computed ONCE (not once per R-tile). ----
    # Fold `scale` into the tiny (H, E2) weight; logits / mask / softmax stay in f32.
    w1s = w1t.astype(jnp.float32) * scale
    logits = jnp.einsum('nije,he->nhij', pair_feat.astype(jnp.float32), w1s,
                        preferred_element_type=jnp.float32)            # (N, H, L, L)
    if attn_mask is not None:
        mask2d = (attn_mask[:, :, None] * attn_mask[:, None, :]) != 0  # (N, L, L)
        logits = jnp.where(mask2d[:, None, :, :], logits, jnp.finfo(jnp.float32).min)
    attn = jax.nn.softmax(logits, axis=-1).astype(dt)                  # (N, H, L, L)

    # ---- Per-generation tile sizing + VMEM budget. ----
    isz = jnp.dtype(dt).itemsize
    csz = jnp.dtype(compute_dtype).itemsize
    try:
        info = pltpu.get_tpu_info()
        vmem_cap = int(getattr(info, "vmem_capacity_bytes", 64 * 2 ** 20))
    except Exception:
        vmem_cap = 64 * 2 ** 20                 # conservative (v7x per-TensorCore)
    vmem_budget = int(vmem_cap * 0.85)

    if r_block is None:
        # Target >=256-wide attention-apply (saturates v6e/v7x 256-wide MXU, harmless on
        # v5e's 128-wide MXU), then shrink until the working set fits the VMEM budget.
        r_block = max(1, -(-256 // Dh))
    tr = max(1, min(int(r_block), R))
    while tr > 1 and _block_vmem_bytes(H, L, tr, Din, Dout, Dh, isz, csz) > vmem_budget:
        tr = max(1, tr // 2)
    need = _block_vmem_bytes(H, L, tr, Din, Dout, Dh, isz, csz)
    vmem_limit = int(min(vmem_budget, max(32 * 2 ** 20, int(need * 1.25))))

    # Pad R up to a multiple of tr (a few % extra FLOPs on zero rows beats collapsing the
    # attention-apply lane width for odd R).
    R_pad = _round_up(R, tr)
    msa_in = msa_emb
    if R_pad != R:
        msa_in = jnp.pad(msa_emb, ((0, 0), (0, R_pad - R), (0, 0), (0, 0)))
    G = R_pad // tr
    grid = (N, G)

    kernel = partial(_pair_to_msa_kernel, n_head=n_head, compute_dtype=compute_dtype)
    out_k = pl.pallas_call(
        kernel,
        out_shape=jax.ShapeDtypeStruct((N, G, H, L, tr * Dh), dt),
        grid_spec=pltpu.PrefetchScalarGridSpec(
            num_scalar_prefetch=0,
            grid=grid,
            in_specs=[
                pl.BlockSpec((None, H, L, L), lambda b, g: (b, 0, 0, 0)),
                pl.BlockSpec((None, tr, L, Din), lambda b, g: (b, g, 0, 0)),
                pl.BlockSpec((Din, Dout), lambda b, g: (0, 0)),
            ],
            out_specs=pl.BlockSpec((None, None, H, L, tr * Dh),
                                   lambda b, g: (b, g, 0, 0, 0)),
        ),
        compiler_params=pltpu.CompilerParams(
            dimension_semantics=("parallel", "parallel"),
            vmem_limit_bytes=vmem_limit,
        ),
    )(attn, msa_in, wv)

    # (N, G, H, L, tr, Dh) -> (N, G, tr, L, H, Dh) -> (N, R_pad, L, Dout); drop padding.
    out = out_k.reshape(N, G, H, L, tr, Dh)
    out = jnp.transpose(out, (0, 1, 4, 3, 2, 5)).reshape(N, R_pad, L, Dout)
    return out[:, :R]


def pair_to_msa_ref(msa_emb, pair_feat, w1t, wv, *, n_head, scaling=1.0,
                    seqlen_scaling=True, attn_mask=None):
    """Pure-JAX reference mirroring the PyTorch forward."""
    N, R, L, Din = msa_emb.shape
    Dout = wv.shape[1]
    scale = scaling / math.sqrt(L) if seqlen_scaling else scaling
    logits = jnp.einsum('nije,he->nhij', pair_feat * scale, w1t)
    if attn_mask is not None:
        mask2d = (attn_mask[:, :, None] * attn_mask[:, None, :]) != 0
        logits = jnp.where(mask2d[:, None, :, :], logits, jnp.finfo(logits.dtype).min)
    attn = jax.nn.softmax(logits, axis=-1)
    V = jnp.einsum('nrjk,ke->nrje', msa_emb, wv).reshape(N, R, L, n_head, Dout // n_head)
    out = jnp.einsum('nhij,nrjhd->nrihd', attn, V)
    return out.reshape(N, R, L, Dout)


if __name__ == "__main__":
    # Small shapes consistent with the module's forward.
    N, R, L = 2, 8, 16          # batch, seq_num, seq_len
    in_dim, out_dim = 32, 32    # Din, Dout
    n_emb_2D, n_head = 8, 4     # E2, H
    scaling = 1.0

    key = jax.random.PRNGKey(0)
    k_msa, k_pair, k_w1, k_wv, k_mask = jax.random.split(key, 5)

    msa_emb = jax.random.normal(k_msa, (N, R, L, in_dim), dtype=jnp.float32)
    pair_feat = jax.random.normal(k_pair, (N, L, L, n_emb_2D), dtype=jnp.float32)
    # Deterministic parameter init (nn.Linear weights, bias=False).
    w1t = jax.random.normal(k_w1, (n_head, n_emb_2D), dtype=jnp.float32) / math.sqrt(n_emb_2D)
    wv = jax.random.normal(k_wv, (in_dim, out_dim), dtype=jnp.float32) / math.sqrt(in_dim)

    # Unmasked path.
    out = pair_to_msa(msa_emb, pair_feat, w1t, wv, n_head=n_head,
                      scaling=scaling, seqlen_scaling=True)
    out = jax.block_until_ready(out)
    ref = pair_to_msa_ref(msa_emb, pair_feat, w1t, wv, n_head=n_head,
                          scaling=scaling, seqlen_scaling=True)
    assert out.shape == (N, R, L, out_dim)
    err = jnp.max(jnp.abs(out - ref))
    assert jnp.allclose(out, ref, rtol=2e-3, atol=2e-3), f"max abs err {err}"

    # Masked path (mask is applied wrapper-side before the softmax, like the module).
    attn_mask = (jax.random.uniform(k_mask, (N, L)) > 0.2).astype(jnp.float32)
    out_m = pair_to_msa(msa_emb, pair_feat, w1t, wv, n_head=n_head,
                        scaling=scaling, seqlen_scaling=True, attn_mask=attn_mask)
    out_m = jax.block_until_ready(out_m)
    ref_m = pair_to_msa_ref(msa_emb, pair_feat, w1t, wv, n_head=n_head,
                            scaling=scaling, seqlen_scaling=True, attn_mask=attn_mask)
    err_m = jnp.max(jnp.abs(out_m - ref_m))
    assert jnp.allclose(out_m, ref_m, rtol=2e-3, atol=2e-3), f"max abs err (masked) {err_m}"

    print("KERNEL_OK")
</pallas_src>

<mosaic_0001>
module attributes {stable_mosaic.version = 11 : i64} {
  func.func @_pair_to_msa_kernel(%arg0: i32, %arg1: i32, %arg2: memref<1x4x16x16xf32, #tpu.memory_space<vmem>>, %arg3: memref<1x8x16x32xf32, #tpu.memory_space<vmem>>, %arg4: memref<32x32xf32, #tpu.memory_space<vmem>>, %arg5: memref<1x1x4x16x64xf32, #tpu.memory_space<vmem>>) attributes {dimension_semantics = [#tpu.dimension_semantics<parallel>, #tpu.dimension_semantics<parallel>], iteration_bounds = array<i64: 2, 1>, scalar_prefetch = 0 : i64, scratch_operands = 0 : i64, tpu.core_type = #tpu.core_type<tc>, window_params = [{transform_indices = @transform_0, window_bounds = array<i64: 1, 4, 16, 16>}, {transform_indices = @transform_1, window_bounds = array<i64: 1, 8, 16, 32>}, {pipeline_mode = #tpu.pipeline_mode<synchronous>, transform_indices = @transform_2, window_bounds = array<i64: 32, 32>}, {transform_indices = @transform_3, window_bounds = array<i64: 1, 1, 4, 16, 64>}]} {
    %c0 = arith.constant 0 : index
    %c0_0 = arith.constant 0 : index
    %c0_1 = arith.constant 0 : index
    %c0_2 = arith.constant 0 : index
    %0 = vector.load %arg3[%c0, %c0_0, %c0_1, %c0_2] : memref<1x8x16x32xf32, #tpu.memory_space<vmem>>, vector<1x8x16x32xf32>
    %1 = vector.shape_cast %0 : vector<1x8x16x32xf32> to vector<8x16x32xf32>
    %c0_3 = arith.constant 0 : index
    %c0_4 = arith.constant 0 : index
    %2 = vector.load %arg4[%c0_3, %c0_4] : memref<32x32xf32, #tpu.memory_space<vmem>>, vector<32x32xf32>
    %3 = vector.shape_cast %1 : vector<8x16x32xf32> to vector<128x32xf32>
    %cst = arith.constant dense<0.000000e+00> : vector<128x32xf32>
    %4 = tpu.matmul %3, %2, %cst {dimension_numbers = #tpu.dot_dimension_numbers<[1], [0], [0], [1], [0, 0, 1, 1], [], []>} : vector<128x32xf32>, vector<32x32xf32>, vector<128x32xf32> -> vector<128x32xf32>
    %5 = vector.shape_cast %4 : vector<128x32xf32> to vector<8x16x4x8xf32>
    %6 = tpu.transpose %5, [2, 1, 0, 3] : vector<8x16x4x8xf32> -> vector<4x16x8x8xf32>
    %7 = vector.shape_cast %6 : vector<4x16x8x8xf32> to vector<4x16x64xf32>
    %c0_5 = arith.constant 0 : index
    %c0_6 = arith.constant 0 : index
    %c0_7 = arith.constant 0 : index
    %c0_8 = arith.constant 0 : index
    %8 = vector.load %arg2[%c0_5, %c0_6, %c0_7, %c0_8] : memref<1x4x16x16xf32, #tpu.memory_space<vmem>>, vector<1x1x16x16xf32>
    %9 = vector.shape_cast %8 : vector<1x1x16x16xf32> to vector<16x16xf32>
    %10 = vector.extract_strided_slice %7 {offsets = [0, 0, 0], sizes = [1, 16, 64], strides = [1, 1, 1]} : vector<4x16x64xf32> to vector<1x16x64xf32>
    %11 = vector.shape_cast %10 : vector<1x16x64xf32> to vector<16x64xf32>
    %cst_9 = arith.constant dense<0.000000e+00> : vector<16x64xf32>
    %12 = tpu.matmul %9, %11, %cst_9 {dimension_numbers = #tpu.dot_dimension_numbers<[1], [0], [0], [1], [0, 0, 1, 1], [], []>} : vector<16x16xf32>, vector<16x64xf32>, vector<16x64xf32> -> vector<16x64xf32>
    %c0_10 = arith.constant 0 : index
    %c0_11 = arith.constant 0 : index
    %c0_12 = arith.constant 0 : index
    %c0_13 = arith.constant 0 : index
    %c0_14 = arith.constant 0 : index
    %13 = vector.load %arg5[%c0_10, %c0_11, %c0_12, %c0_13, %c0_14] : memref<1x1x4x16x64xf32, #tpu.memory_space<vmem>>, vector<1x1x1x16x64xf32>
    %14 = vector.shape_cast %13 : vector<1x1x1x16x64xf32> to vector<16x64xf32>
    %15 = vector.shape_cast %12 : vector<16x64xf32> to vector<1x1x1x16x64xf32>
    tpu.vector_store %arg5[%c0_10, %c0_11, %c0_12, %c0_13, %c0_14], %15 {strides = array<i32>} : memref<1x1x4x16x64xf32, #tpu.memory_space<vmem>>, vector<1x1x1x16x64xf32>,
    %c0_15 = arith.constant 0 : index
    %c1 = arith.constant 1 : index
    %c0_16 = arith.constant 0 : index
    %c0_17 = arith.constant 0 : index
    %16 = vector.load %arg2[%c0_15, %c1, %c0_16, %c0_17] : memref<1x4x16x16xf32, #tpu.memory_space<vmem>>, vector<1x1x16x16xf32>
    %17 = vector.shape_cast %16 : vector<1x1x16x16xf32> to vector<16x16xf32>
    %18 = vector.extract_strided_slice %7 {offsets = [1, 0, 0], sizes = [1, 16, 64], strides = [1, 1, 1]} : vector<4x16x64xf32> to vector<1x16x64xf32>
    %19 = vector.shape_cast %18 : vector<1x16x64xf32> to vector<16x64xf32>
    %cst_18 = arith.constant dense<0.000000e+00> : vector<16x64xf32>
    %20 = tpu.matmul %17, %19, %cst_18 {dimension_numbers = #tpu.dot_dimension_numbers<[1], [0], [0], [1], [0, 0, 1, 1], [], []>} : vector<16x16xf32>, vector<16x64xf32>, vector<16x64xf32> -> vector<16x64xf32>
    %c0_19 = arith.constant 0 : index
    %c0_20 = arith.constant 0 : index
    %c1_21 = arith.constant 1 : index
    %c0_22 = arith.constant 0 : index
    %c0_23 = arith.constant 0 : index
    %21 = vector.load %arg5[%c0_19, %c0_20, %c1_21, %c0_22, %c0_23] : memref<1x1x4x16x64xf32, #tpu.memory_space<vmem>>, vector<1x1x1x16x64xf32>
    %22 = vector.shape_cast %21 : vector<1x1x1x16x64xf32> to vector<16x64xf32>
    %23 = vector.shape_cast %20 : vector<16x64xf32> to vector<1x1x1x16x64xf32>
    tpu.vector_store %arg5[%c0_19, %c0_20, %c1_21, %c0_22, %c0_23], %23 {strides = array<i32>} : memref<1x1x4x16x64xf32, #tpu.memory_space<vmem>>, vector<1x1x1x16x64xf32>,
    %c0_24 = arith.constant 0 : index
    %c2 = arith.constant 2 : index
    %c0_25 = arith.constant 0 : index
    %c0_26 = arith.constant 0 : index
    %24 = vector.load %arg2[%c0_24, %c2, %c0_25, %c0_26] : memref<1x4x16x16xf32, #tpu.memory_space<vmem>>, vector<1x1x16x16xf32>
    %25 = vector.shape_cast %24 : vector<1x1x16x16xf32> to vector<16x16xf32>
    %26 = vector.extract_strided_slice %7 {offsets = [2, 0, 0], sizes = [1, 16, 64], strides = [1, 1, 1]} : vector<4x16x64xf32> to vector<1x16x64xf32>
    %27 = vector.shape_cast %26 : vector<1x16x64xf32> to vector<16x64xf32>
    %cst_27 = arith.constant dense<0.000000e+00> : vector<16x64xf32>
    %28 = tpu.matmul %25, %27, %cst_27 {dimension_numbers = #tpu.dot_dimension_numbers<[1], [0], [0], [1], [0, 0, 1, 1], [], []>} : vector<16x16xf32>, vector<16x64xf32>, vector<16x64xf32> -> vector<16x64xf32>
    %c0_28 = arith.constant 0 : index
    %c0_29 = arith.constant 0 : index
    %c2_30 = arith.constant 2 : index
    %c0_31 = arith.constant 0 : index
    %c0_32 = arith.constant 0 : index
    %29 = vector.load %arg5[%c0_28, %c0_29, %c2_30, %c0_31, %c0_32] : memref<1x1x4x16x64xf32, #tpu.memory_space<vmem>>, vector<1x1x1x16x64xf32>
    %30 = vector.shape_cast %29 : vector<1x1x1x16x64xf32> to vector<16x64xf32>
    %31 = vector.shape_cast %28 : vector<16x64xf32> to vector<1x1x1x16x64xf32>
    tpu.vector_store %arg5[%c0_28, %c0_29, %c2_30, %c0_31, %c0_32], %31 {strides = array<i32>} : memref<1x1x4x16x64xf32, #tpu.memory_space<vmem>>, vector<1x1x1x16x64xf32>,
    %c0_33 = arith.constant 0 : index
    %c3 = arith.constant 3 : index
    %c0_34 = arith.constant 0 : index
    %c0_35 = arith.constant 0 : index
    %32 = vector.load %arg2[%c0_33, %c3, %c0_34, %c0_35] : memref<1x4x16x16xf32, #tpu.memory_space<vmem>>, vector<1x1x16x16xf32>
    %33 = vector.shape_cast %32 : vector<1x1x16x16xf32> to vector<16x16xf32>
    %34 = vector.extract_strided_slice %7 {offsets = [3, 0, 0], sizes = [1, 16, 64], strides = [1, 1, 1]} : vector<4x16x64xf32> to vector<1x16x64xf32>
    %35 = vector.shape_cast %34 : vector<1x16x64xf32> to vector<16x64xf32>
    %cst_36 = arith.constant dense<0.000000e+00> : vector<16x64xf32>
    %36 = tpu.matmul %33, %35, %cst_36 {dimension_numbers = #tpu.dot_dimension_numbers<[1], [0], [0], [1], [0, 0, 1, 1], [], []>} : vector<16x16xf32>, vector<16x64xf32>, vector<16x64xf32> -> vector<16x64xf32>
    %c0_37 = arith.constant 0 : index
    %c0_38 = arith.constant 0 : index
    %c3_39 = arith.constant 3 : index
    %c0_40 = arith.constant 0 : index
    %c0_41 = arith.constant 0 : index
    %37 = vector.load %arg5[%c0_37, %c0_38, %c3_39, %c0_40, %c0_41] : memref<1x1x4x16x64xf32, #tpu.memory_space<vmem>>, vector<1x1x1x16x64xf32>
    %38 = vector.shape_cast %37 : vector<1x1x1x16x64xf32> to vector<16x64xf32>
    %39 = vector.shape_cast %36 : vector<16x64xf32> to vector<1x1x1x16x64xf32>
    tpu.vector_store %arg5[%c0_37, %c0_38, %c3_39, %c0_40, %c0_41], %39 {strides = array<i32>} : memref<1x1x4x16x64xf32, #tpu.memory_space<vmem>>, vector<1x1x1x16x64xf32>,
    return
  }
  func.func @transform_0(%arg0: i32, %arg1: i32) -> (i32, i32, i32, i32) {
    %c0_i32 = arith.constant 0 : i32
    %c0_i32_0 = arith.constant 0 : i32
    %c0_i32_1 = arith.constant 0 : i32
    %c0_i32_2 = arith.constant 0 : i32
    return %arg0, %c0_i32, %c0_i32_0, %c0_i32_1 : i32, i32, i32, i32
  }
  func.func @transform_1(%arg0: i32, %arg1: i32) -> (i32, i32, i32, i32) {
    %c0_i32 = arith.constant 0 : i32
    %c0_i32_0 = arith.constant 0 : i32
    %c0_i32_1 = arith.constant 0 : i32
    return %arg0, %arg1, %c0_i32, %c0_i32_0 : i32, i32, i32, i32
  }
  func.func @transform_2(%arg0: i32, %arg1: i32) -> (i32, i32) {
    %c0_i32 = arith.constant 0 : i32
    %c0_i32_0 = arith.constant 0 : i32
    %c0_i32_1 = arith.constant 0 : i32
    return %c0_i32, %c0_i32_0 : i32, i32
  }
  func.func @transform_3(%arg0: i32, %arg1: i32) -> (i32, i32, i32, i32, i32) {
    %c0_i32 = arith.constant 0 : i32
    %c0_i32_0 = arith.constant 0 : i32
    %c0_i32_1 = arith.constant 0 : i32
    %c0_i32_2 = arith.constant 0 : i32
    return %arg0, %arg1, %c0_i32, %c0_i32_0, %c0_i32_1 : i32, i32, i32, i32, i32
  }
}

</mosaic_0001>

<bundles_post_ra>
// kernel: tpu_custom_call.1
= control target key start
LH: loop header
LB: loop body
LE: loop exit
PB: predicated region body
PF: predicated region fallthrough
CT: control target
= control target key end

     0   :  { %s7211_s0 = inlined_call_operand.hbm [shape: f32[2,4,16,16], index: 0, kind: input, shape index: {}]   ;;  %s7212_s1 = inlined_call_operand.hbm [shape: f32[2,8,16,32], index: 1, kind: input, shape index: {}]   ;;  %s7213_s2 = inlined_call_operand.hbm [shape: f32[32,32], index: 2, kind: input, shape index: {}]   ;;  %s7214_s3 = inlined_call_operand.hbm [shape: f32[2,1,4,16,64], index: 3, kind: output, shape index: {}]  }
   0x1   :  { %7276 = sst [smem:[#allocation63_spill]] %s7211_s0 }
   0x2   :  { %7277 = sst [smem:[#allocation64_spill]] %s7213_s2 }
   0x3   :  { %8 = vsyncpa [#allocation3], 0 }
   0x4   :  { %10 = vsyncpa [#allocation3 + $0x1], 0 }
   0x5   :  { %11 = vsyncpa [#allocation6], 0 }
   0x6   :  { %13 = vsyncpa [#allocation6 + $0x1], 0 }
   0x7   :  { %14 = vsyncpa [#allocation4], 0 }
   0x8   :  { %16 = vsyncpa [#allocation4 + $0x1], 0  ;;  %s5401_s12 = smov 0   ;;  %s5403_s13 = smov 0  }
   0x9   :  { %s5405_s14 = smov 0   ;;  %s5407_s15 = smov 0  }
   0xa   :  { %s5409_s16 = smov 0   ;;  %s5411_s17 = smov 0  }
   0xb LB: > { %s5432_s18 = sadd.s32 4294967295, %s5360_s17   ;;  %s4670_s19 = sadd.s32 4294967294, %s5360_s17   ;;  %s5360_s17 = sphi %s5411_s17, %s22_s17   ;;  %s5356_s16 = sphi %s5409_s16, %s7418_s16   ;;  %s5352_s15 = sphi %s5407_s15, %s7417_s15   ;;  %s5348_s14 = sphi %s5405_s14, %s7416_s14   ;;  %s5344_s13 = sphi %s5403_s13, %s7415_s13   ;;  %s5340_s12 = sphi %s5401_s12, %s7414_s12  }
   0xc   : > { %p54_p0 = scmp.ne.s32.totalorder %s5344_s13, %s5340_s12  ;;  %p7215_p1 = scmp.eq.s32.totalorder %s5432_s18, 0 }
   0xd   : > { %p135_p3 = scmp.eq.s32.totalorder %s4670_s19, 1  ;;  %p4671_p5 = scmp.ge.s32.totalorder %s5360_s17, 1 }
   0xe   : > { %p5441_p4 = por %p7215_p1, %p54_p0  ;;  %p142_p7 = scmp.lt.s32.totalorder %s5360_s17, 3 }
   0xf   : > { %p5446_p6 = por %p135_p3, %p54_p0  ;;  %s5362_s23 = smov [#allocation7]  }
  0x10   : > { %s7278_s20 = scalar_select %p5441_p4, 1, 0 }
  0x11   : > { %s7279_s21 = scalar_select %p5446_p6, 1, 0 }
  0x12   : > { %p5451_p8 = pnand %p4671_p5, %p142_p7  ;;  %s154_s24 = sshll.u32 %s5362_s23, 4  ;;  %s155_s24 = int_to_ptr.vmem [resolvable:$true] %s154_s24 }
  0x13   : > { %s34_s26 = sadd.s32 1, %s5356_s16  ;;  %s7282_s2 = sld [smem:[#allocation64_spill]] }
  0x14   : > { %s7280_s22 = scalar_select %p5451_p8, 1, 0 }
  0x15   : > { %p4959_p9 = pneg %p5451_p8 }
  0x17   : > { %p5460_p11 = pnand %p4959_p9, %p7215_p1 }
  0x19   : > { %s5182_s29 = scalar_lea.hbm %s7282_s2, 512  ;;  %p5184_p13 = pneg %p5460_p11 }
  0x1a   : > { %p5183_p12 = scmp.ne.s32.totalorder %s7282_s2, %s5182_s29  ;;  %p5189_p5 = scmp.lt.u32.totalorder %s5182_s29, %s7282_s2 }
  0x1c   : > { %p5185_p0 = pnand %p5184_p13, %p5183_p12 }
  0x1e   : > { %p5186_p3 = pneg %p5185_p0 }
  0x20   : > { %p5191_p7 = pnand %p5189_p5, %p5186_p3 }
  0x22   : > { %5194 = shalt.err (!%p5191_p7)
}
  0x23   : > { %s5195_s7 = scalar_lea.vmem %s155_s24, 512  ;;  %p5203_p2 = scmp.lt.s32.totalorder %s155_s24, %s155_s24 }
  0x24   : > { %p5196_p9 = scmp.ne.s32.totalorder %s155_s24, %s5195_s7  ;;  %p5204_p6 = scmp.lt.s32.totalorder %s5195_s7, %s5195_s7 }
  0x26   : > { %p5198_p10 = pnand %p5196_p9, %p5184_p13  ;;  %p5205_p4 = por %p5204_p6, %p5203_p2 }
  0x28   : > { %p5199_p1 = pneg %p5198_p10 }
  0x2a   : > { %p5206_p8 = pnand %p5205_p4, %p5199_p1 }
  0x2c   : > { %5209 = shalt.err (!%p5206_p8)
}
  0x2d   : > { %s7218_s8 = smov 128   ;;  %s5364_s9 = smov 8  }
  0x2e   : > { %4962 = dma.hbm_to_vmem [thread:$0]  (!%p5460_p11), %s7282_s2, 512, %s155_s24, [#allocation6], %s7218_s8, %s7218_s8, %s5364_s9  }
  0x2f   : > { %p36_p1 = scmp.ge.s32.totalorder %s34_s26, 2  ;;  %s41_s19 = sadd.s32 1, %s5348_s14 }
  0x30   : > { %p48_p2 = scmp.ne.s32.totalorder %s5348_s14, %s5344_s13  ;;  %p49_p4 = scmp.eq.s32.totalorder %s5360_s17, 0 }
  0x31   : > { %s7420_s26 = smov (%p36_p1, %s34_s26), 0  ;;  %p7285_p8 = scmp.eq.s32.totalorder %s5432_s18, 1 }
  0x32   : > { %7283 = sst [smem:[#allocation13_spill]] %s7420_s26  ;;  %p5490_p6 = por %p49_p4, %p48_p2 }
  0x33   : > { %p5496_p10 = por %p7285_p8, %p48_p2  ;;  %s38_s27 = ssub.s32 %s5356_s16, %s7420_s26 }
  0x34   : > { %p4975_p11 = scmp.lt.s32.totalorder %s5360_s17, 2  ;;  %p39_p12 = scmp.eq.s32.totalorder %s38_s27, 0 }
  0x35   : > { %s5504_s24 = sand.u32 1, %s5348_s14   ;;  %s4822_s30 = sshll.u32 %s5356_s16, 10 }
  0x36   : > { %s4674_s28 = sshll.u32 %s5504_s24, 6  ;;  %s7287_s0 = sld [smem:[#allocation63_spill]] }
  0x37   : > { %s5508_s29 = scalar_select %p39_p12, %s5348_s14, %s41_s19  }
  0x38   : > { %s172_s7 = scalar_lea.vmem [#allocation2], %s4674_s28  ;;  %p5520_p13 = pnand %p4975_p11, %p5490_p6 }
  0x39   : > { %s179_s10 = sshll.u32 %s172_s7, 4  ;;  %s4677_s27 = sshll.u32 %s5504_s24, 7  ;;  %s5516_s10 = int_to_ptr.vmem [resolvable:$true] %s179_s10 }
  0x3a   : > { %s169_s4 = scalar_lea.sflag [#allocation3], %s5504_s24  ;;  %p5212_p3 = pneg %p5520_p13 }
  0x3c   : > { %s5514_s6 = scalar_lea.hbm %s7287_s0, %s4822_s30  ;;  %s5215_s23 = scalar_lea.hbm %s7287_s0, 2048 }
  0x3d   : > { %s5210_s30 = scalar_lea.hbm %s5514_s6, 1024  ;;  %p5216_p9 = scmp.lt.u32.totalorder %s5514_s6, %s7287_s0 }
  0x3e   : > { %p5211_p0 = scmp.ne.s32.totalorder %s5514_s6, %s5210_s30  ;;  %p5217_p1 = scmp.lt.u32.totalorder %s5215_s23, %s5210_s30 }
  0x3f   : > { %p5219_p4 = scmp.lt.u32.totalorder %s5210_s30, %s5514_s6 }
  0x40   : > { %p5213_p5 = pnand %p5212_p3, %p5211_p0  ;;  %p5218_p2 = por %p5217_p1, %p5216_p9 }
  0x42   : > { %p5214_p7 = pneg %p5213_p5  ;;  %p5220_p6 = por %p5219_p4, %p5218_p2 }
  0x44   : > { %p5221_p8 = pnand %p5220_p6, %p5214_p7 }
  0x46   : > { %5224 = shalt.err (!%p5221_p8)
}
  0x47   : > { %s5225_s19 = scalar_lea.vmem %s5516_s10, 1024  ;;  %s5365_s28 = smov [#allocation2]  }
  0x48   : > { %p5226_p11 = scmp.ne.s32.totalorder %s5516_s10, %s5225_s19  ;;  %s5230_s5 = sshll.u32 %s5365_s28, 4  ;;  %s5231_s5 = int_to_ptr.vmem [resolvable:$false] %s5230_s5 }
  0x49   : > { %s5232_s8 = scalar_lea.vmem %s5231_s5, 2048  ;;  %p5233_p5 = scmp.lt.s32.totalorder %s5516_s10, %s5231_s5 }
  0x4a   : > { %p5228_p12 = pnand %p5226_p11, %p5212_p3  ;;  %p5234_p9 = scmp.lt.s32.totalorder %s5232_s8, %s5225_s19 }
  0x4c   : > { %p5229_p0 = pneg %p5228_p12  ;;  %p5235_p1 = por %p5234_p9, %p5233_p5 }
  0x4e   : > { %p5236_p2 = pnand %p5235_p1, %p5229_p0 }
  0x50   : > { %5239 = shalt.err (!%p5236_p2)
}
  0x51   : > { %s7289_s30 = smov 128   ;;  %s4823_s23 = sshll.u32 %s5356_s16, 11 }
  0x52   : > { %4966 = dma.hbm_to_vmem [thread:$0]  (!%p5520_p13), %s5514_s6, 1024, %s5516_s10, %s169_s4, %s7289_s30, %s7289_s30, %s5364_s9  }
  0x53   : > { %s5561_s28 = scalar_lea.hbm %s7212_s1, %s4823_s23  ;;  %s193_s5 = scalar_lea.vmem [#allocation5], %s4677_s27 }
  0x54   : > { %s203_s8 = sshll.u32 %s193_s5, 4  ;;  %s7290_s0 = sand.u32 1, %s5360_s17   ;;  %s5565_s8 = int_to_ptr.vmem [resolvable:$true] %s203_s8 }
  0x55   : > { %s5569_s2 = scalar_lea.sflag [#allocation6], %s7290_s0  ;;  %s5240_s26 = scalar_lea.hbm %s5561_s28, 2048 }
  0x56   : > { %p5241_p7 = scmp.ne.s32.totalorder %s5561_s28, %s5240_s26  ;;  %s5245_s24 = scalar_lea.hbm %s7212_s1, 4096 }
  0x57   : > { %p5246_p8 = scmp.lt.u32.totalorder %s5561_s28, %s7212_s1  ;;  %p5247_p11 = scmp.lt.u32.totalorder %s5245_s24, %s5240_s26 }
  0x58   : > { %p5243_p4 = pnand %p5241_p7, %p5212_p3  ;;  %p5249_p0 = scmp.lt.u32.totalorder %s5240_s26, %s5561_s28 }
  0x59   : > { %p5248_p12 = por %p5247_p11, %p5246_p8 }
  0x5a   : > { %p5244_p6 = pneg %p5243_p4 }
  0x5b   : > { %p5250_p5 = por %p5249_p0, %p5248_p12 }
  0x5d   : > { %p5251_p9 = pnand %p5250_p5, %p5244_p6 }
  0x5f   : > { %5254 = shalt.err (!%p5251_p9)
}
  0x60   : > { %s5255_s0 = scalar_lea.vmem %s5565_s8, 2048  ;;  %s5366_s27 = smov [#allocation5]  }
  0x61   : > { %p5256_p1 = scmp.ne.s32.totalorder %s5565_s8, %s5255_s0  ;;  %s5260_s7 = sshll.u32 %s5366_s27, 4  ;;  %s5261_s7 = int_to_ptr.vmem [resolvable:$false] %s5260_s7 }
  0x62   : > { %s5262_s19 = scalar_lea.vmem %s5261_s7, 4096  ;;  %p5263_p4 = scmp.lt.s32.totalorder %s5565_s8, %s5261_s7 }
  0x63   : > { %p5258_p2 = pnand %p5256_p1, %p5212_p3  ;;  %p5264_p8 = scmp.lt.s32.totalorder %s5262_s19, %s5255_s0 }
  0x65   : > { %p5259_p7 = pneg %p5258_p2  ;;  %p5265_p11 = por %p5264_p8, %p5263_p4 }
  0x67   : > { %p5266_p12 = pnand %p5265_p11, %p5259_p7 }
  0x69   : > { %5269 = shalt.err (!%p5266_p12)
}
  0x6a   : > { %4969 = dma.hbm_to_vmem [thread:$0]  (!%p5520_p13), %s5561_s28, 2048, %s5565_s8, %s5569_s2, %s7289_s30, %s7289_s30, %s5364_s9  }
  0x6b   : > { %p7291_p3 = scmp.ne.s32.totalorder %s7280_s22, 0 }
  0x6d   : > { %215 = sbr.rel (%p7291_p3) target bundleno = 1077 (0x435), region = 32 }
  0x74   : > { %s5601_s26 = sand.u32 1, %s5344_s13   ;;  %p7292_p6 = scmp.ne.s32.totalorder %s7278_s20, 0 }
  0x75   : > { %s4681_s5 = sshll.u32 %s5601_s26, 6  ;;  %s218_s6 = scalar_lea.sflag [#allocation3], %s5601_s26 }
  0x76   : > { %s5607_s11 = scalar_lea.vmem [#allocation2], %s4681_s5 }
  0x77   : > { %5323 = dma.done.wait (%p7292_p6), %s218_s6, 1024  }
  0x78   : > { %5325 = vsyncadd (%p7292_p6), %s218_s6, 4294966272  ;;  %s226_s2 = sand.u32 1, %s5432_s18   ;;  %s4682_s22 = sshll.u32 %s5601_s26, 7 }
  0x79   : > { %s227_s9 = scalar_lea.sflag [#allocation6], %s226_s2  ;;  %s5615_s30 = scalar_lea.vmem [#allocation5], %s4682_s22 }
  0x7a   : > { %5327 = dma.done.wait (%p7292_p6), %s227_s9, 2048  }
  0x7b   : > { %5329 = vsyncadd (%p7292_p6), %s227_s9, 4294965248  ;;  %p7293_p13 = scmp.eq.s32.totalorder %s5432_s18, 0 }
  0x7d   : > { %5331 = dma.done.wait (%p7293_p13), [#allocation6], 512   ;;  %p7294_p0 = pmov %p7293_p13 }
  0x7e   : > { %vm283_vm0 = vcmask 261120   ;;  %v279_v0 = vld [vmem:[#allocation7] sm:$0xff]  ;;  %v280_v1 = vld [vmem:[#allocation7 + $0x8] sm:$0xff]  ;;  %v281_v2 = vld [vmem:[#allocation7 + $0x10] sm:$0xff]  ;;  %s5367_s18 = smov 112   ;;  %s5368_s20 = smov 120   ;;  %v642_v40 = vlaneseq }
  0x7f   : > { %5333 = vsyncadd (%p7294_p0), [#allocation6], 4294966784  ;;  %v4921_v3 = vpack.c.bf16 %v280_v1, %v279_v0  ;;  %v282_v4 = vld [vmem:[#allocation7 + $0x18] sm:$0xff]  ;;  %v263_v5 = vld [vmem:[%s5615_s30] sm:$0xff]  ;;  %s5369_s28 = smov 104   ;;  %s5372_s8 = smov 16  }
  0x80   : > { %v4925_v6 = vpack.c.bf16 %v282_v4, %v281_v2  ;;  %4869 = vmatprep.mubr.msk.f32.mxu0 %vm283_vm0, %v263_v5  ;;  %v275_v7 = vld [vmem:[%s5615_s30 + $0x60] sm:$0xff]  ;;  %v264_v8 = vld [vmem:[%s5615_s30 + $0x8] sm:$0xff]  ;;  %v265_v10 = vld [vmem:[%s5615_s30 + $0x10] sm:$0xff]  ;;  %v5370_v38 = vmov 1983009808   ;;  %v5785_v42 = vshrl.u32 %v642_v40, 7 }
  0x81   : > { %4922 = vmatprep.subr.bf16.mxu0 %v4921_v3  ;;  %4945 = vmatprep.subr.bf16.mxu1 %v4921_v3  ;;  %v276_v9 = vld [vmem:[%s5615_s30 + $0x68] sm:$0xff]  ;;  %v277_v11 = vld [vmem:[%s5615_s30 + $0x70] sm:$0xff]  ;;  %v266_v12 = vld [vmem:[%s5615_s30 + $0x18] sm:$0xff]  ;;  %v640_v39 = vunpack.c.l.s4 %v5370_v38  ;;  %s5373_s10 = smov 8   ;;  %s5374_s24 = smov 24   ;;  %vm4134_vm1 = vcmask 130048  }
  0x82   : > { %4924 = vmatpush3.bf16.msra.mxu0 %v4921_v3  ;;  %4947 = vmatpush3.bf16.msra.mxu1 %v4921_v3  ;;  %v278_v13 = vld [vmem:[%s5615_s30 + $0x78] sm:$0xff]  ;;  %v267_v14 = vld [vmem:[%s5615_s30 + $0x20] sm:$0xff]  ;;  %v268_v15 = vld [vmem:[%s5615_s30 + $0x28] sm:$0xff]  ;;  %s5375_s4 = smov 32   ;;  %s5376_s23 = smov 40   ;;  %vm4125_vm2 = vcmask 64512  }
  0x83   : > { %4926 = vmatprep.subr.bf16.mxu0 %v4925_v6  ;;  %4946 = vmatprep.subr.bf16.mxu1 %v4925_v6  ;;  %v269_v16 = vld [vmem:[%s5615_s30 + $0x30] sm:$0xff]  ;;  %v270_v17 = vld [vmem:[%s5615_s30 + $0x38] sm:$0xff]  ;;  %v271_v18 = vld [vmem:[%s5615_s30 + $0x40] sm:$0xff]  ;;  %v641_v41 = vunpack.c.0.s8 %v640_v39  ;;  %v5371_v39 = vmov 1934713408   ;;  %s5377_s0 = smov 48  }
  0x84   : > { %4887 = vmatprep.mubr.msk.f32.mxu1 %vm283_vm0, %v275_v7  ;;  %v272_v19 = vld [vmem:[%s5615_s30 + $0x48] sm:$0xff]  ;;  %v273_v20 = vld [vmem:[%s5615_s30 + $0x50] sm:$0xff]  ;;  %v274_v21 = vld [vmem:[%s5615_s30 + $0x58] sm:$0xff]  ;;  %v672_v40 = vunpack.c.l.s4 %v5371_v39  ;;  %s5378_s27 = smov 56   ;;  %vm4143_vm3 = vcmask 195584   ;;  %vm4160_vm4 = vcmask 326656  }
  0x85   : > { %v5790_v47 = vsub.s32 %v641_v41, %v5785_v42  ;;  %vm4169_vm5 = vcmask 392192   ;;  %vm4178_vm6 = vcmask 457728   ;;  %vm4270_vm7 = vcmask 523264   ;;  %s261_s7 = scalar_lea.vmem [#allocation8], %s4681_s5  ;;  %s4824_s5 = sshll.u32 %s5352_s15, 10 }
  0x86   : > { %4928 = vmatpush3.bf16.msra.mxu0 %v4925_v6  ;;  %4948 = vmatpush3.bf16.msra.mxu1 %v4925_v6  ;;  %s4550_s19 = sshll.u32 %s261_s7, 4  ;;  %s7159_s2 = scalar_lea.hbm %s7214_s3, %s4824_s5  ;;  %s7154_s19 = int_to_ptr.vmem [resolvable:$true] %s4550_s19 }
  0x87   : > { %s4535_s22 = scalar_lea.sflag [#allocation4], %s5601_s26  ;;  %s5270_s9 = scalar_lea.vmem %s7154_s19, 1024 }
  0x88   : > { %p5271_p5 = scmp.ne.s32.totalorder %s7154_s19, %s5270_s9  ;;  %s5379_s15 = smov [#allocation8]  }
  0x89   : > { %4870 = vmatmul.mubr.msk.f32.vlgmr.msra.gmra.mrb[0].mxu0 %vm283_vm0, %v264_v8  ;;  %4888 = vmatmul.mubr.msk.f32.vlgmr.msra.gmra.mrb[0].mxu1 %vm283_vm0, %v276_v9  ;;  %s5274_s30 = sshll.u32 %s5379_s15, 4  ;;  %s5275_s30 = int_to_ptr.vmem [resolvable:$false] %s5274_s30 }
  0x8a   : > { %4872 = vmatprep.mubr.msk.f32.mxu0 %vm283_vm0, %v265_v10  ;;  %4890 = vmatprep.mubr.msk.f32.mxu1 %vm283_vm0, %v277_v11  ;;  %p5272_p9 = pnand %p5271_p5, %p5496_p10  ;;  %p5277_p2 = scmp.lt.s32.totalorder %s7154_s19, %s5275_s30 }
  0x8c   : > { %p5273_p1 = pneg %p5272_p9 }
  0x8d   : > { %4873 = vmatmul.mubr.msk.f32.gmra.mrb[2].mxu0 %vm283_vm0, %v266_v12  ;;  %4891 = vmatmul.mubr.msk.f32.gmra.mrb[2].mxu1 %vm283_vm0, %v278_v13 }
  0x8e   : > { %4875 = vmatprep.mubr.msk.f32.mxu0 %vm283_vm0, %v267_v14 }
  0x91   : > { %4876 = vmatmul.mubr.msk.f32.gmra.mrb[4].mxu0 %vm283_vm0, %v268_v15 }
  0x92   : > { %4878 = vmatprep.mubr.msk.f32.mxu0 %vm283_vm0, %v269_v16 }
  0x95   : > { %4879 = vmatmul.mubr.msk.f32.gmra.mrb[6].mxu0 %vm283_vm0, %v270_v17 }
  0x96   : > { %4881 = vmatprep.mubr.msk.f32.mxu0 %vm283_vm0, %v271_v18 }
  0x99   : > { %4882 = vmatmul.mubr.msk.f32.gmra.mrb[8].mxu0 %vm283_vm0, %v272_v19 }
  0x9a   : > { %4884 = vmatprep.mubr.msk.f32.mxu0 %vm283_vm0, %v273_v20 }
  0x9d   : > { %4885 = vmatmul.mubr.msk.f32.gmra.mrb[10].mxu0 %vm283_vm0, %v274_v21 }
 0x15c   : > { %v5657_v22 = vpop.f32.mrb[0].mxu0  ;;  %v5659_v23 = vpop.f32.mrb[0].mxu1 }
 0x15d   : > { %543 = vrot.lane.b32.xlu1 %v5657_v22, %s5367_s18  ;;  %495 = vrot.lane.b32.xlu0 %v5657_v22, %s5368_s20  ;;  %v5665_v24 = vpop.f32.mrb[1].mxu0  ;;  %v5667_v25 = vpop.f32.mrb[1].mxu1 }
 0x160   : > { %v5669_v26 = vpop.f32.mrb[2].mxu0  ;;  %v5671_v27 = vpop.f32.mrb[2].mxu1 }
 0x161   : > { %591 = vrot.lane.b32.xlu1 %v5657_v22, %s5369_s28  ;;  %493 = vrot.lane.b32.xlu0 %v5665_v24, %s5368_s20  ;;  %v5677_v28 = vpop.f32.mrb[3].mxu0  ;;  %v5679_v29 = vpop.f32.mrb[3].mxu1 }
 0x164   : > { %v5681_v30 = vpop.f32.mrb[4].mxu0 }
 0x165   : > { %519 = vrot.lane.b32.xlu1 %v5659_v23, %s5368_s20  ;;  %541 = vrot.lane.b32.xlu0 %v5665_v24, %s5367_s18  ;;  %v5687_v31 = vpop.f32.mrb[5].mxu0 }
 0x168   : > { %v5689_v32 = vpop.f32.mrb[6].mxu0 }
 0x169   : > { %567 = vrot.lane.b32.xlu1 %v5659_v23, %s5367_s18  ;;  %589 = vrot.lane.b32.xlu0 %v5665_v24, %s5369_s28  ;;  %v5695_v33 = vpop.f32.mrb[7].mxu0 }
 0x16c   : > { %v5697_v34 = vpop.f32.mrb[8].mxu0 }
 0x16d   : > { %615 = vrot.lane.b32.xlu1 %v5659_v23, %s5369_s28  ;;  %517 = vrot.lane.b32.xlu0 %v5667_v25, %s5368_s20  ;;  %v5703_v35 = vpop.f32.mrb[9].mxu0 }
 0x170   : > { %v5705_v36 = vpop.f32.mrb[10].mxu0 }
 0x171   : > { %565 = vrot.lane.b32.xlu0 %v5667_v25, %s5367_s18  ;;  %499 = vrot.lane.b32.xlu1 %v5669_v26, %s5368_s20  ;;  %v5711_v37 = vpop.f32.mrb[11].mxu0 }
 0x175   : > { %613 = vrot.lane.b32.xlu0 %v5667_v25, %s5369_s28  ;;  %547 = vrot.lane.b32.xlu1 %v5669_v26, %s5367_s18 }
 0x179   : > { %595 = vrot.lane.b32.xlu1 %v5669_v26, %s5369_s28  ;;  %545 = vrot.lane.b32.xlu0 %v5677_v28, %s5367_s18 }
 0x17d   : > { %523 = vrot.lane.b32.xlu1 %v5671_v27, %s5368_s20  ;;  %593 = vrot.lane.b32.xlu0 %v5677_v28, %s5369_s28 }
 0x181   : > { %571 = vrot.lane.b32.xlu1 %v5671_v27, %s5367_s18  ;;  %521 = vrot.lane.b32.xlu0 %v5679_v29, %s5368_s20 }
 0x185   : > { %569 = vrot.lane.b32.xlu0 %v5679_v29, %s5367_s18  ;;  %497 = vrot.lane.b32.xlu1 %v5677_v28, %s5368_s20 }
 0x189   : > { %503 = vrot.lane.b32.xlu1 %v5681_v30, %s5368_s20  ;;  %501 = vrot.lane.b32.xlu0 %v5687_v31, %s5368_s20 }
 0x18d   : > { %551 = vrot.lane.b32.xlu1 %v5681_v30, %s5367_s18  ;;  %549 = vrot.lane.b32.xlu0 %v5687_v31, %s5367_s18 }
 0x191   : > { %599 = vrot.lane.b32.xlu1 %v5681_v30, %s5369_s28  ;;  %597 = vrot.lane.b32.xlu0 %v5687_v31, %s5369_s28 }
 0x195   : > { %507 = vrot.lane.b32.xlu1 %v5689_v32, %s5368_s20  ;;  %505 = vrot.lane.b32.xlu0 %v5695_v33, %s5368_s20 }
 0x199   : > { %555 = vrot.lane.b32.xlu1 %v5689_v32, %s5367_s18  ;;  %553 = vrot.lane.b32.xlu0 %v5695_v33, %s5367_s18 }
 0x19d   : > { %603 = vrot.lane.b32.xlu1 %v5689_v32, %s5369_s28  ;;  %601 = vrot.lane.b32.xlu0 %v5695_v33, %s5369_s28 }
 0x1a1   : > { %511 = vrot.lane.b32.xlu1 %v5697_v34, %s5368_s20  ;;  %509 = vrot.lane.b32.xlu0 %v5703_v35, %s5368_s20 }
 0x1a5   : > { %559 = vrot.lane.b32.xlu1 %v5697_v34, %s5367_s18  ;;  %557 = vrot.lane.b32.xlu0 %v5703_v35, %s5367_s18 }
 0x1a9   : > { %607 = vrot.lane.b32.xlu1 %v5697_v34, %s5369_s28  ;;  %605 = vrot.lane.b32.xlu0 %v5703_v35, %s5369_s28 }
 0x1ad   : > { %515 = vrot.lane.b32.xlu1 %v5705_v36, %s5368_s20  ;;  %513 = vrot.lane.b32.xlu0 %v5711_v37, %s5368_s20 }
 0x1b1   : > { %563 = vrot.lane.b32.xlu1 %v5705_v36, %s5367_s18  ;;  %561 = vrot.lane.b32.xlu0 %v5711_v37, %s5367_s18  ;;  %s5276_s18 = scalar_lea.vmem %s5275_s30, 2048 }
 0x1b2   : > { %p5278_p7 = scmp.lt.s32.totalorder %s5276_s18, %s5270_s9 }
 0x1b4   : > { %p5279_p4 = por %p5278_p7, %p5277_p2 }
 0x1b5   : > { %611 = vrot.lane.b32.xlu1 %v5705_v36, %s5369_s28  ;;  %609 = vrot.lane.b32.xlu0 %v5711_v37, %s5369_s28 }
 0x1b6   : > { %p5280_p8 = pnand %p5279_p4, %p5273_p1 }
 0x1b9   : > { %619 = vrot.lane.b32.xlu1 %v5671_v27, %s5369_s28  ;;  %617 = vrot.lane.b32.xlu0 %v5679_v29, %s5369_s28 }
 0x1cf   : > { %v544_v43 = vpop.permute.xlu1 %543  ;;  %v496_v44 = vpop.permute.xlu0 %495 }
 0x1d0   : > { %v705_v45 = vcombine.low %v5657_v22, %v544_v43  ;;  %v706_v46 = vcombine.high %v5657_v22, %v544_v43 }
 0x1d2   : > { %v5793_v52 = vrot.slane %v705_v45, %v5790_v47  ;;  %v5796_v53 = vrot.slane %v706_v46, %v5790_v47 }
 0x1d3   : > { %v592_v48 = vpop.permute.xlu1 %591  ;;  %v494_v49 = vpop.permute.xlu0 %493 }
 0x1d4   : > { %v721_v50 = vcombine.low %v496_v44, %v592_v48  ;;  %v722_v51 = vcombine.high %v496_v44, %v592_v48 }
 0x1d6   : > { %v5799_v54 = vrot.slane %v721_v50, %v5790_v47  ;;  %v5802_v55 = vrot.slane %v722_v51, %v5790_v47 }
 0x1d7   : > { %v520_v56 = vpop.permute.xlu1 %519  ;;  %v542_v57 = vpop.permute.xlu0 %541 }
 0x1d8   : > { %v737_v58 = vcombine.low %v5793_v52, %v5799_v54  ;;  %v738_v59 = vcombine.high %v5793_v52, %v5799_v54  ;;  %v753_v60 = vcombine.low %v5796_v53, %v5802_v55  ;;  %v754_v61 = vcombine.high %v5796_v53, %v5802_v55 }
 0x1db   : > { %v568_v62 = vpop.permute.xlu1 %567  ;;  %v590_v63 = vpop.permute.xlu0 %589 }
 0x1dc   : > { %v1521_v0 = vcombine.low %v5659_v23, %v568_v62  ;;  %v1522_v1 = vcombine.high %v5659_v23, %v568_v62  ;;  %v653_v50 = vcombine.low %v494_v49, %v590_v63  ;;  %v654_v51 = vcombine.high %v494_v49, %v590_v63 }
 0x1dd   : > { %v637_v62 = vcombine.low %v5665_v24, %v542_v57 }
 0x1de   : > { %v5815_v6 = vrot.slane %v1521_v0, %v5790_v47  ;;  %v5818_v7 = vrot.slane %v1522_v1, %v5790_v47  ;;  %v638_v0 = vcombine.high %v5665_v24, %v542_v57 }
 0x1df   : > { %v616_v2 = vpop.permute.xlu1 %615  ;;  %v518_v3 = vpop.permute.xlu0 %517 }
 0x1e0   : > { %v1537_v4 = vcombine.low %v520_v56, %v616_v2  ;;  %v1538_v5 = vcombine.high %v520_v56, %v616_v2  ;;  %v673_v56 = vunpack.c.0.s8 %v672_v40 }
 0x1e2   : > { %v5821_v8 = vrot.slane %v1537_v4, %v5790_v47  ;;  %v5824_v9 = vrot.slane %v1538_v5, %v5790_v47  ;;  %v668_v4 = vrot.slane %v654_v51, %v5790_v47  ;;  %v5865_v5 = vsub.s32 %v673_v56, %v5785_v42 }
 0x1e3   : > { %v566_v10 = vpop.permute.xlu0 %565  ;;  %v500_v11 = vpop.permute.xlu1 %499 }
 0x1e4   : > { %v1453_v12 = vcombine.low %v5667_v25, %v566_v10  ;;  %v1454_v13 = vcombine.high %v5667_v25, %v566_v10  ;;  %v1553_v14 = vcombine.low %v5815_v6, %v5821_v8  ;;  %v1554_v15 = vcombine.high %v5815_v6, %v5821_v8 }
 0x1e5   : > { %v1569_v16 = vcombine.low %v5818_v7, %v5824_v9  ;;  %v1570_v17 = vcombine.high %v5818_v7, %v5824_v9  ;;  %v645_v10 = vrot.slane %v637_v62, %v5790_v47  ;;  %v5901_v52 = vrot.slane %v754_v61, %v5865_v5 }
 0x1e6   : > { %v5837_v22 = vrot.slane %v1453_v12, %v5790_v47  ;;  %v5840_v23 = vrot.slane %v1454_v13, %v5790_v47  ;;  %v652_v12 = vrot.slane %v638_v0, %v5790_v47 }
 0x1e7   : > { %v614_v18 = vpop.permute.xlu0 %613  ;;  %v548_v19 = vpop.permute.xlu1 %547 }
 0x1e8   : > { %v1469_v20 = vcombine.low %v518_v3, %v614_v18  ;;  %v1470_v21 = vcombine.high %v518_v3, %v614_v18  ;;  %v661_v3 = vrot.slane %v653_v50, %v5790_v47  ;;  %v842_v42 = vcombine.high %v5669_v26, %v548_v19 }
 0x1ea   : > { %v5843_v25 = vrot.slane %v1469_v20, %v5790_v47  ;;  %v5846_v38 = vrot.slane %v1470_v21, %v5790_v47  ;;  %v669_v20 = vcombine.low %v645_v10, %v661_v3  ;;  %v670_v21 = vcombine.high %v645_v10, %v661_v3 }
 0x1eb   : > { %v596_v41 = vpop.permute.xlu1 %595  ;;  %v5848_v43 = vpop.permute.xlu0 %545 }
 0x1ec   : > { %v1485_v44 = vcombine.low %v5837_v22, %v5843_v25  ;;  %v1486_v45 = vcombine.high %v5837_v22, %v5843_v25  ;;  %v1501_v46 = vcombine.low %v5840_v23, %v5846_v38  ;;  %v1502_v48 = vcombine.high %v5840_v23, %v5846_v38 }
 0x1ed   : > { %v857_v13 = vcombine.low %v500_v11, %v596_v41  ;;  %v858_v18 = vcombine.high %v500_v11, %v596_v41  ;;  %v685_v22 = vcombine.low %v652_v12, %v668_v4  ;;  %v841_v23 = vcombine.low %v5669_v26, %v548_v19 }
 0x1ee   : > { %v5879_v25 = vrot.slane %v737_v58, %v5865_v5  ;;  %v5885_v11 = vrot.slane %v738_v59, %v5865_v5  ;;  %v5895_v58 = vrot.slane %v753_v60, %v5865_v5  ;;  %v5904_v54 = vrot.slane %v669_v20, %v5865_v5 }
 0x1ef   : > { %v5860_v1 = vpop.permute.xlu1 %523  ;;  %v594_v2 = vpop.permute.xlu0 %593  ;;  %v865_v40 = vrot.slane %v857_v13, %v5790_v47  ;;  %v872_v41 = vrot.slane %v858_v18, %v5790_v47  ;;  %v5907_v50 = vrot.slane %v670_v21, %v5865_v5  ;;  %v849_v51 = vrot.slane %v841_v23, %v5790_v47 }
 0x1f0   : > { %7295 = vst [vmem:[#allocation14_spill] sm:$0xff] %v5860_v1  ;;  %v856_v60 = vrot.slane %v842_v42, %v5790_v47  ;;  %v773_v53 = vcombine.low %v5677_v28, %v5848_v43  ;;  %v774_v55 = vcombine.high %v5677_v28, %v5848_v43  ;;  %v5931_v13 = vrot.slane %v1554_v15, %v5865_v5 }
 0x1f1   : > { %v873_v3 = vcombine.low %v849_v51, %v865_v40  ;;  %v5937_v28 = vrot.slane %v1569_v16, %v5865_v5  ;;  %v5950_v6 = vrot.slane %v1486_v45, %v5865_v5  ;;  %v5953_v8 = vrot.slane %v1501_v46, %v5865_v5 }
 0x1f2   : > { %v889_v10 = vcombine.low %v856_v60, %v872_v41  ;;  %v5956_v15 = vrot.slane %v1502_v48, %v5865_v5  ;;  %v781_v16 = vrot.slane %v773_v53, %v5790_v47  ;;  %v788_v18 = vrot.slane %v774_v55, %v5790_v47 }
 0x1f3   : > { %v572_v49 = vpop.permute.xlu1 %571  ;;  %v5869_v63 = vpop.permute.xlu0 %521 }
 0x1f4   : > { %7296 = vst [vmem:[#allocation15_spill] sm:$0xff] %v5869_v63  ;;  %v1657_v24 = vcombine.low %v5671_v27, %v572_v49  ;;  %v1658_v57 = vcombine.high %v5671_v27, %v572_v49  ;;  %v686_v27 = vcombine.high %v652_v12, %v668_v4  ;;  %v874_v4 = vcombine.high %v849_v51, %v865_v40 }
 0x1f5   : > { %v890_v12 = vcombine.high %v856_v60, %v872_v41  ;;  %v5925_v49 = vrot.slane %v1553_v14, %v5865_v5  ;;  %v5944_v14 = vrot.slane %v1570_v17, %v5865_v5  ;;  %v5968_v46 = vrot.slane %v889_v10, %v5865_v5 }
 0x1f6   : > { %v5915_v56 = vrot.slane %v686_v27, %v5865_v5  ;;  %v5965_v45 = vrot.slane %v874_v4, %v5865_v5  ;;  %v5976_v42 = vrot.slane %v1657_v24, %v5790_v47  ;;  %v5979_v27 = vrot.slane %v1658_v57, %v5790_v47 }
 0x1f7   : > { %v570_v38 = vpop.permute.xlu0 %569  ;;  %v498_v39 = vpop.permute.xlu1 %497  ;;  %v5971_v48 = vrot.slane %v890_v12, %v5865_v5 }
 0x1f8   : > { %v1589_v26 = vcombine.low %v5679_v29, %v570_v38  ;;  %v1590_v19 = vcombine.high %v5679_v29, %v570_v38  ;;  %v789_v59 = vcombine.low %v498_v39, %v594_v2  ;;  %v5910_v29 = vrot.slane %v685_v22, %v5865_v5  ;;  %7297 = vst [vmem:[#allocation16_spill] sm:$0xff] %v5976_v42 }
 0x1f9   : > { %v790_v61 = vcombine.high %v498_v39, %v594_v2  ;;  %v5947_v2 = vrot.slane %v1485_v44, %v5865_v5  ;;  %v5962_v44 = vrot.slane %v873_v3, %v5865_v5  ;;  %7298 = vst [vmem:[#allocation17_spill] sm:$0xff] %v5979_v27 }
 0x1fa   : > { %v797_v43 = vrot.slane %v789_v59, %v5790_v47  ;;  %v5982_v38 = vrot.slane %v1589_v26, %v5790_v47  ;;  %v5985_v39 = vrot.slane %v1590_v19, %v5790_v47 }
 0x1fb   : > { %v504_v62 = vpop.permute.xlu1 %503  ;;  %v502_v0 = vpop.permute.xlu0 %501  ;;  %v804_v7 = vrot.slane %v790_v61, %v5790_v47 }
 0x1fc   : > { %v805_v20 = vcombine.low %v781_v16, %v797_v43  ;;  %v806_v21 = vcombine.high %v781_v16, %v797_v43  ;;  %7299 = vst [vmem:[#allocation18_spill] sm:$0xff] %v5982_v38  ;;  %7300 = vst [vmem:[#allocation19_spill] sm:$0xff] %v5985_v39 }
 0x1fd   : > { %v821_v40 = vcombine.low %v788_v18, %v804_v7  ;;  %v822_v41 = vcombine.high %v788_v18, %v804_v7 }
 0x1fe   : > { %v5990_v57 = vrot.slane %v805_v20, %v5865_v5  ;;  %v5993_v26 = vrot.slane %v806_v21, %v5865_v5 }
 0x1ff   : > { %v552_v9 = vpop.permute.xlu1 %551  ;;  %v550_v17 = vpop.permute.xlu0 %549  ;;  %v6005_v12 = vrot.slane %v822_v41, %v5865_v5 }
 0x200   : > { %v977_v22 = vcombine.low %v5681_v30, %v552_v9  ;;  %v978_v23 = vcombine.high %v5681_v30, %v552_v9  ;;  %v909_v59 = vcombine.low %v5687_v31, %v550_v17  ;;  %v910_v51 = vcombine.high %v5687_v31, %v550_v17 }
 0x202   : > { %v985_v19 = vrot.slane %v977_v22, %v5790_v47  ;;  %v992_v3 = vrot.slane %v978_v23, %v5790_v47  ;;  %v917_v43 = vrot.slane %v909_v59, %v5790_v47  ;;  %v924_v16 = vrot.slane %v910_v51, %v5790_v47 }
 0x203   : > { %v600_v60 = vpop.permute.xlu1 %599  ;;  %v598_v30 = vpop.permute.xlu0 %597 }
 0x204   : > { %v993_v53 = vcombine.low %v504_v62, %v600_v60  ;;  %v994_v24 = vcombine.high %v504_v62, %v600_v60  ;;  %v925_v55 = vcombine.low %v502_v0, %v598_v30  ;;  %v926_v61 = vcombine.high %v502_v0, %v598_v30 }
 0x205   : > { %v6002_v0 = vrot.slane %v821_v40, %v5865_v5 }
 0x206   : > { %v1001_v4 = vrot.slane %v993_v53, %v5790_v47  ;;  %v1008_v31 = vrot.slane %v994_v24, %v5790_v47  ;;  %v933_v10 = vrot.slane %v925_v55, %v5790_v47  ;;  %v940_v62 = vrot.slane %v926_v61, %v5790_v47 }
 0x207   : > { %v6009_v18 = vpop.permute.xlu1 %507  ;;  %v6011_v7 = vpop.permute.xlu0 %505 }
 0x208   : > { %v1009_v9 = vcombine.low %v985_v19, %v1001_v4  ;;  %v1010_v17 = vcombine.high %v985_v19, %v1001_v4  ;;  %v1025_v20 = vcombine.low %v992_v3, %v1008_v31  ;;  %v1026_v21 = vcombine.high %v992_v3, %v1008_v31 }
 0x209   : > { %v941_v22 = vcombine.low %v917_v43, %v933_v10  ;;  %v942_v23 = vcombine.high %v917_v43, %v933_v10  ;;  %v957_v60 = vcombine.low %v924_v16, %v940_v62  ;;  %v958_v40 = vcombine.high %v924_v16, %v940_v62 }
 0x20a   : > { %v1017_v30 = vrot.slane %v1009_v9, %v5865_v5  ;;  %v1024_v41 = vrot.slane %v1010_v17, %v5865_v5  ;;  %v1033_v59 = vrot.slane %v1025_v20, %v5865_v5  ;;  %v1040_v51 = vrot.slane %v1026_v21, %v5865_v5 }
 0x20b   : > { %v949_v53 = vrot.slane %v941_v22, %v5865_v5  ;;  %v956_v24 = vrot.slane %v942_v23, %v5865_v5  ;;  %v965_v55 = vrot.slane %v957_v60, %v5865_v5  ;;  %v972_v61 = vrot.slane %v958_v40, %v5865_v5  ;;  %v556_v19 = vpop.permute.xlu1 %555  ;;  %v554_v3 = vpop.permute.xlu0 %553 }
 0x20c   : > { %v2269_v4 = vcombine.low %v5879_v25, %v1017_v30  ;;  %v4717_v31 = vcombine.high %v5879_v25, %v1017_v30  ;;  %v2405_v10 = vcombine.low %v5885_v11, %v1024_v41  ;;  %v4721_v62 = vcombine.high %v5885_v11, %v1024_v41 }
 0x20d   : > { %v2541_v43 = vcombine.low %v5895_v58, %v1033_v59  ;;  %v4725_v16 = vcombine.high %v5895_v58, %v1033_v59  ;;  %v2677_v9 = vcombine.low %v5901_v52, %v1040_v51  ;;  %v4729_v17 = vcombine.high %v5901_v52, %v1040_v51 }
 0x20e   : > { %v6030_v20 = vrot.slane %v2269_v4, %v5790_v47  ;;  %v6033_v21 = vrot.slane %v4717_v31, %v5790_v47  ;;  %v6036_v25 = vrot.slane %v2405_v10, %v5790_v47  ;;  %v6039_v22 = vrot.slane %v4721_v62, %v5790_v47 }
 0x20f   : > { %v6042_v11 = vrot.slane %v2541_v43, %v5790_v47  ;;  %v6045_v58 = vrot.slane %v4725_v16, %v5790_v47  ;;  %v6048_v52 = vrot.slane %v2677_v9, %v5790_v47  ;;  %v6051_v23 = vrot.slane %v4729_v17, %v5790_v47  ;;  %v604_v60 = vpop.permute.xlu1 %603  ;;  %v602_v40 = vpop.permute.xlu0 %601 }
 0x210   : > { %v1725_v30 = vcombine.low %v5904_v54, %v949_v53  ;;  %v4701_v41 = vcombine.high %v5904_v54, %v949_v53  ;;  %v1861_v59 = vcombine.low %v5907_v50, %v956_v24  ;;  %v4705_v51 = vcombine.high %v5907_v50, %v956_v24 }
 0x211   : > { %v1997_v4 = vcombine.low %v5910_v29, %v965_v55  ;;  %v4709_v31 = vcombine.high %v5910_v29, %v965_v55  ;;  %v2133_v10 = vcombine.low %v5915_v56, %v972_v61  ;;  %v4713_v62 = vcombine.high %v5915_v56, %v972_v61 }
 0x212   : > { %v6062_v43 = vrot.slane %v1725_v30, %v5790_v47  ;;  %v6065_v16 = vrot.slane %v4701_v41, %v5790_v47  ;;  %v6068_v54 = vrot.slane %v1861_v59, %v5790_v47  ;;  %v6071_v53 = vrot.slane %v4705_v51, %v5790_v47 }
 0x213   : > { %v6074_v50 = vrot.slane %v1997_v4, %v5790_v47  ;;  %v6077_v29 = vrot.slane %v4709_v31, %v5790_v47  ;;  %v6080_v56 = vrot.slane %v2133_v10, %v5790_v47  ;;  %v6083_v24 = vrot.slane %v4713_v62, %v5790_v47  ;;  %v6085_v55 = vpop.permute.xlu1 %511  ;;  %v6087_v61 = vpop.permute.xlu0 %509 }
 0x214   : > { %v1113_v9 = vcombine.low %v5689_v32, %v556_v19  ;;  %v1114_v17 = vcombine.high %v5689_v32, %v556_v19  ;;  %v1045_v30 = vcombine.low %v5695_v33, %v554_v3  ;;  %v1046_v41 = vcombine.high %v5695_v33, %v554_v3 }
 0x215   : > { %v1129_v59 = vcombine.low %v6009_v18, %v604_v60  ;;  %v1130_v51 = vcombine.high %v6009_v18, %v604_v60  ;;  %v1061_v4 = vcombine.low %v6011_v7, %v602_v40  ;;  %v1062_v31 = vcombine.high %v6011_v7, %v602_v40 }
 0x216   : > { %v1121_v10 = vrot.slane %v1113_v9, %v5790_v47  ;;  %v1128_v62 = vrot.slane %v1114_v17, %v5790_v47  ;;  %v1053_v39 = vrot.slane %v1045_v30, %v5790_v47  ;;  %v1060_v32 = vrot.slane %v1046_v41, %v5790_v47 }
 0x217   : > { %v1137_v19 = vrot.slane %v1129_v59, %v5790_v47  ;;  %v1144_v33 = vrot.slane %v1130_v51, %v5790_v47  ;;  %v1069_v3 = vrot.slane %v1061_v4, %v5790_v47  ;;  %v1076_v18 = vrot.slane %v1062_v31, %v5790_v47  ;;  %v6105_v60 = vpop.permute.xlu1 %559  ;;  %v6107_v38 = vpop.permute.xlu0 %557 }
 0x219   : > { %v1145_v30 = vcombine.low %v1121_v10, %v1137_v19  ;;  %v1146_v41 = vcombine.high %v1121_v10, %v1137_v19  ;;  %v1161_v59 = vcombine.low %v1128_v62, %v1144_v33  ;;  %v1162_v51 = vcombine.high %v1128_v62, %v1144_v33 }
 0x21a   : > { %v1077_v4 = vcombine.low %v1053_v39, %v1069_v3  ;;  %v1078_v31 = vcombine.high %v1053_v39, %v1069_v3  ;;  %v1093_v27 = vcombine.low %v1060_v32, %v1076_v18  ;;  %v1094_v42 = vcombine.high %v1060_v32, %v1076_v18 }
 0x21b   : > { %v1153_v63 = vrot.slane %v1145_v30, %v5865_v5  ;;  %v1160_v7 = vrot.slane %v1146_v41, %v5865_v5  ;;  %v1169_v40 = vrot.slane %v1161_v59, %v5865_v5  ;;  %v1176_v1 = vrot.slane %v1162_v51, %v5865_v5 }
 0x21c   : > { %v6122_v9 = vrot.slane %v1077_v4, %v5865_v5  ;;  %v6125_v17 = vrot.slane %v1078_v31, %v5865_v5  ;;  %v6128_v10 = vrot.slane %v1093_v27, %v5865_v5  ;;  %v6131_v39 = vrot.slane %v1094_v42, %v5865_v5 }
 0x21d   : > { %v2277_v62 = vcombine.low %v5962_v44, %v1153_v63  ;;  %v4718_v32 = vcombine.high %v5962_v44, %v1153_v63  ;;  %v2413_v19 = vcombine.low %v5965_v45, %v1160_v7  ;;  %v4722_v33 = vcombine.high %v5965_v45, %v1160_v7 }
 0x21e   : > { %v2549_v3 = vcombine.low %v5968_v46, %v1169_v40  ;;  %v4726_v18 = vcombine.high %v5968_v46, %v1169_v40  ;;  %v2685_v30 = vcombine.low %v5971_v48, %v1176_v1  ;;  %v4730_v27 = vcombine.high %v5971_v48, %v1176_v1 }
 0x21f   : > { %v2284_v41 = vrot.slane %v2277_v62, %v5790_v47  ;;  %v2352_v42 = vrot.slane %v4718_v32, %v5790_v47  ;;  %v2420_v59 = vrot.slane %v2413_v19, %v5790_v47  ;;  %v2488_v63 = vrot.slane %v4722_v33, %v5790_v47 }
 0x220   : > { %v2556_v44 = vrot.slane %v2549_v3, %v5790_v47  ;;  %v2624_v45 = vrot.slane %v4726_v18, %v5790_v47  ;;  %v2692_v7 = vrot.slane %v2685_v30, %v5790_v47  ;;  %v2760_v46 = vrot.slane %v4730_v27, %v5790_v47 }
 0x221   : > { %v2301_v40 = vcombine.low %v6030_v20, %v2284_v41  ;;  %v2302_v1 = vcombine.high %v6030_v20, %v2284_v41  ;;  %v2369_v48 = vcombine.low %v6033_v21, %v2352_v42  ;;  %v2370_v51 = vcombine.high %v6033_v21, %v2352_v42 }
 0x222   : > { %v2437_v4 = vcombine.low %v6036_v25, %v2420_v59  ;;  %v2438_v31 = vcombine.high %v6036_v25, %v2420_v59  ;;  %v2505_v62 = vcombine.low %v6039_v22, %v2488_v63  ;;  %v2506_v32 = vcombine.high %v6039_v22, %v2488_v63 }
 0x223   : > { %v6158_v19 = vrot.slane %v2301_v40, %v5865_v5  ;;  %v6161_v33 = vrot.slane %v2302_v1, %v5865_v5  ;;  %v6164_v20 = vrot.slane %v2369_v48, %v5865_v5  ;;  %v6167_v3 = vrot.slane %v2370_v51, %v5865_v5 }
 0x224   : > { %v6170_v21 = vrot.slane %v2437_v4, %v5865_v5  ;;  %v6173_v25 = vrot.slane %v2438_v31, %v5865_v5  ;;  %v6176_v22 = vrot.slane %v2505_v62, %v5865_v5  ;;  %v6179_v18 = vrot.slane %v2506_v32, %v5865_v5 }
 0x225   : > { %7301 = vst [vmem:[#allocation20_spill] sm:$0xff] %v6161_v33  ;;  %7302 = vst [vmem:[#allocation21_spill] sm:$0xff] %v6167_v3  ;;  %v2573_v30 = vcombine.low %v6042_v11, %v2556_v44  ;;  %v2574_v27 = vcombine.high %v6042_v11, %v2556_v44  ;;  %v2641_v41 = vcombine.low %v6045_v58, %v2624_v45 }
 0x226   : > { %7303 = vst [vmem:[#allocation22_spill] sm:$0xff] %v6173_v25  ;;  %7304 = vst [vmem:[#allocation23_spill] sm:$0xff] %v6179_v18  ;;  %v2642_v42 = vcombine.high %v6045_v58, %v2624_v45  ;;  %v2709_v59 = vcombine.low %v6048_v52, %v2692_v7  ;;  %v2710_v63 = vcombine.high %v6048_v52, %v2692_v7  ;;  %v6213_v7 = vpop.permute.xlu1 %607 }
 0x227   : > { %v2777_v40 = vcombine.low %v6051_v23, %v2760_v46  ;;  %v2778_v1 = vcombine.high %v6051_v23, %v2760_v46  ;;  %v6190_v48 = vrot.slane %v2573_v30, %v5865_v5  ;;  %v6193_v51 = vrot.slane %v2574_v27, %v5865_v5  ;;  %v6215_v46 = vpop.permute.xlu0 %605 }
 0x228   : > { %v6196_v11 = vrot.slane %v2641_v41, %v5865_v5  ;;  %v6199_v44 = vrot.slane %v2642_v42, %v5865_v5  ;;  %v6202_v58 = vrot.slane %v2709_v59, %v5865_v5  ;;  %v6205_v52 = vrot.slane %v2710_v63, %v5865_v5 }
 0x229   : > { %7305 = vst [vmem:[#allocation24_spill] sm:$0xff] %v6193_v51  ;;  %v6208_v23 = vrot.slane %v2777_v40, %v5865_v5  ;;  %v6211_v45 = vrot.slane %v2778_v1, %v5865_v5  ;;  %v1733_v4 = vcombine.low %v5990_v57, %v6122_v9  ;;  %v4702_v31 = vcombine.high %v5990_v57, %v6122_v9 }
 0x22a   : > { %7306 = vst [vmem:[#allocation25_spill] sm:$0xff] %v6199_v44  ;;  %7307 = vst [vmem:[#allocation26_spill] sm:$0xff] %v6205_v52  ;;  %v1869_v62 = vcombine.low %v5993_v26, %v6125_v17  ;;  %v4706_v32 = vcombine.high %v5993_v26, %v6125_v17  ;;  %v2005_v30 = vcombine.low %v6002_v0, %v6128_v10 }
 0x22b   : > { %7308 = vst [vmem:[#allocation27_spill] sm:$0xff] %v6211_v45  ;;  %v4710_v27 = vcombine.high %v6002_v0, %v6128_v10  ;;  %v2141_v41 = vcombine.low %v6005_v12, %v6131_v39  ;;  %v4714_v42 = vcombine.high %v6005_v12, %v6131_v39  ;;  %v1740_v57 = vrot.slane %v1733_v4, %v5790_v47 }
 0x22c   : > { %v1808_v9 = vrot.slane %v4702_v31, %v5790_v47  ;;  %v1876_v59 = vrot.slane %v1869_v62, %v5790_v47  ;;  %v1944_v26 = vrot.slane %v4706_v32, %v5790_v47  ;;  %v2012_v17 = vrot.slane %v2005_v30, %v5790_v47  ;;  %v6249_v30 = vpop.permute.xlu1 %515 }
 0x22d   : > { %v2080_v63 = vrot.slane %v4710_v27, %v5790_v47  ;;  %v2148_v0 = vrot.slane %v2141_v41, %v5790_v47  ;;  %v2216_v10 = vrot.slane %v4714_v42, %v5790_v47  ;;  %v1757_v40 = vcombine.low %v6062_v43, %v1740_v57  ;;  %v6251_v27 = vpop.permute.xlu0 %513 }
 0x22e   : > { %v1758_v12 = vcombine.high %v6062_v43, %v1740_v57  ;;  %v1825_v39 = vcombine.low %v6065_v16, %v1808_v9  ;;  %v1826_v1 = vcombine.high %v6065_v16, %v1808_v9  ;;  %v1893_v4 = vcombine.low %v6068_v54, %v1876_v59 }
 0x22f   : > { %v1894_v31 = vcombine.high %v6068_v54, %v1876_v59  ;;  %v1961_v62 = vcombine.low %v6071_v53, %v1944_v26  ;;  %v1962_v32 = vcombine.high %v6071_v53, %v1944_v26  ;;  %v6254_v41 = vrot.slane %v1757_v40, %v5865_v5 }
 0x230   : > { %v6257_v43 = vrot.slane %v1758_v12, %v5865_v5  ;;  %v6260_v16 = vrot.slane %v1825_v39, %v5865_v5  ;;  %v6263_v42 = vrot.slane %v1826_v1, %v5865_v5  ;;  %v6266_v54 = vrot.slane %v1893_v4, %v5865_v5 }
 0x231   : > { %v6269_v53 = vrot.slane %v1894_v31, %v5865_v5  ;;  %v6272_v57 = vrot.slane %v1961_v62, %v5865_v5  ;;  %v6275_v9 = vrot.slane %v1962_v32, %v5865_v5  ;;  %v2029_v59 = vcombine.low %v6074_v50, %v2012_v17 }
 0x232   : > { %7309 = vst [vmem:[#allocation28_spill] sm:$0xff] %v6257_v43  ;;  %7310 = vst [vmem:[#allocation29_spill] sm:$0xff] %v6263_v42  ;;  %v2030_v26 = vcombine.high %v6074_v50, %v2012_v17  ;;  %v2097_v40 = vcombine.low %v6077_v29, %v2080_v63  ;;  %v2098_v12 = vcombine.high %v6077_v29, %v2080_v63 }
 0x233   : > { %7311 = vst [vmem:[#allocation30_spill] sm:$0xff] %v6269_v53  ;;  %7312 = vst [vmem:[#allocation31_spill] sm:$0xff] %v6275_v9  ;;  %v2165_v39 = vcombine.low %v6080_v56, %v2148_v0  ;;  %v2166_v1 = vcombine.high %v6080_v56, %v2148_v0  ;;  %v2233_v4 = vcombine.low %v6083_v24, %v2216_v10  ;;  %v564_v0 = vpop.permute.xlu1 %563 }
 0x234   : > { %v2234_v31 = vcombine.high %v6083_v24, %v2216_v10  ;;  %v6286_v62 = vrot.slane %v2029_v59, %v5865_v5  ;;  %v6289_v32 = vrot.slane %v2030_v26, %v5865_v5  ;;  %v6292_v50 = vrot.slane %v2097_v40, %v5865_v5  ;;  %v562_v10 = vpop.permute.xlu0 %561 }
 0x235   : > { %v6295_v17 = vrot.slane %v2098_v12, %v5865_v5  ;;  %v6298_v29 = vrot.slane %v2165_v39, %v5865_v5  ;;  %v6301_v56 = vrot.slane %v2166_v1, %v5865_v5  ;;  %v6304_v24 = vrot.slane %v2233_v4, %v5865_v5 }
 0x236   : > { %7313 = vst [vmem:[#allocation32_spill] sm:$0xff] %v6289_v32  ;;  %v6307_v63 = vrot.slane %v2234_v31, %v5865_v5  ;;  %v7317_v59 = vcombine.low %v5697_v34, %v6105_v60  ;;  %v7318_v40 = vcombine.high %v5697_v34, %v6105_v60  ;;  %v7319_v39 = vcombine.low %v5703_v35, %v6107_v38 }
 0x237   : > { %7314 = vst [vmem:[#allocation33_spill] sm:$0xff] %v6295_v17  ;;  %7315 = vst [vmem:[#allocation34_spill] sm:$0xff] %v6301_v56  ;;  %v7320_v4 = vcombine.high %v5703_v35, %v6107_v38  ;;  %v1265_v44 = vcombine.low %v6085_v55, %v6213_v7  ;;  %v1197_v34 = vcombine.low %v6087_v61, %v6215_v46 }
 0x238   : > { %7316 = vst [vmem:[#allocation35_spill] sm:$0xff] %v6307_v63  ;;  %v1257_v26 = vrot.slane %v7317_v59, %v5790_v47  ;;  %v1264_v12 = vrot.slane %v7318_v40, %v5790_v47  ;;  %v1189_v1 = vrot.slane %v7319_v39, %v5790_v47  ;;  %v1266_v59 = vcombine.high %v6085_v55, %v6213_v7 }
 0x239   : > { %v1196_v31 = vrot.slane %v7320_v4, %v5790_v47  ;;  %v1198_v60 = vcombine.high %v6087_v61, %v6215_v46  ;;  %v1385_v40 = vcombine.low %v5705_v36, %v564_v0  ;;  %v1386_v39 = vcombine.high %v5705_v36, %v564_v0 }
 0x23a   : > { %v1317_v45 = vcombine.low %v5711_v37, %v562_v10  ;;  %v1318_v35 = vcombine.high %v5711_v37, %v562_v10  ;;  %v1273_v38 = vrot.slane %v1265_v44, %v5790_v47  ;;  %v1280_v4 = vrot.slane %v1266_v59, %v5790_v47 }
 0x23b   : > { %v1205_v55 = vrot.slane %v1197_v34, %v5790_v47  ;;  %v1212_v7 = vrot.slane %v1198_v60, %v5790_v47  ;;  %v6342_v51 = vrot.slane %v1385_v40, %v5790_v47  ;;  %v6345_v61 = vrot.slane %v1386_v39, %v5790_v47 }
 0x23c   : > { %v6348_v36 = vrot.slane %v1317_v45, %v5790_v47  ;;  %v6351_v46 = vrot.slane %v1318_v35, %v5790_v47  ;;  %v1281_v37 = vcombine.low %v1257_v26, %v1273_v38  ;;  %v1282_v44 = vcombine.high %v1257_v26, %v1273_v38 }
 0x23d   : > { %v1297_v0 = vcombine.low %v1264_v12, %v1280_v4  ;;  %v1298_v10 = vcombine.high %v1264_v12, %v1280_v4  ;;  %v1213_v59 = vcombine.low %v1189_v1, %v1205_v55  ;;  %v1214_v34 = vcombine.high %v1189_v1, %v1205_v55  ;;  %v612_v55 = vpop.permute.xlu1 %611 }
 0x23e   : > { %v1229_v52 = vcombine.low %v1196_v31, %v1212_v7  ;;  %v1230_v60 = vcombine.high %v1196_v31, %v1212_v7  ;;  %v1289_v40 = vrot.slane %v1281_v37, %v5865_v5  ;;  %v1296_v3 = vrot.slane %v1282_v44, %v5865_v5  ;;  %v610_v7 = vpop.permute.xlu0 %609 }
 0x23f   : > { %v1305_v39 = vrot.slane %v1297_v0, %v5865_v5  ;;  %v1312_v45 = vrot.slane %v1298_v10, %v5865_v5  ;;  %v1221_v18 = vrot.slane %v1213_v59, %v5865_v5  ;;  %v1228_v35 = vrot.slane %v1214_v34, %v5865_v5 }
 0x240   : > { %v1237_v26 = vrot.slane %v1229_v52, %v5865_v5  ;;  %v1244_v12 = vrot.slane %v1230_v60, %v5865_v5  ;;  %v2285_v1 = vcombine.low %v1289_v40, %v5925_v49  ;;  %v4719_v31 = vcombine.high %v1289_v40, %v5925_v49 }
 0x241   : > { %v2421_v38 = vcombine.low %v1296_v3, %v5931_v13  ;;  %v4723_v4 = vcombine.high %v1296_v3, %v5931_v13  ;;  %v2557_v37 = vcombine.low %v1305_v39, %v5937_v28  ;;  %v4727_v44 = vcombine.high %v1305_v39, %v5937_v28 }
 0x242   : > { %v2693_v0 = vcombine.low %v1312_v45, %v5944_v14  ;;  %v4731_v52 = vcombine.high %v1312_v45, %v5944_v14  ;;  %v6370_v10 = vrot.slane %v2285_v1, %v5790_v47  ;;  %v6373_v59 = vrot.slane %v4719_v31, %v5790_v47 }
 0x243   : > { %v6376_v49 = vrot.slane %v2421_v38, %v5790_v47  ;;  %v6379_v13 = vrot.slane %v4723_v4, %v5790_v47  ;;  %v6382_v3 = vrot.slane %v2557_v37, %v5790_v47  ;;  %v6385_v28 = vrot.slane %v4727_v44, %v5790_v47 }
 0x244   : > { %v6388_v14 = vrot.slane %v2693_v0, %v5790_v47  ;;  %v6391_v34 = vrot.slane %v4731_v52, %v5790_v47  ;;  %v1741_v60 = vcombine.low %v1221_v18, %v5947_v2  ;;  %v4703_v40 = vcombine.high %v1221_v18, %v5947_v2 }
 0x245   : > { %v1877_v39 = vcombine.low %v1228_v35, %v5950_v6  ;;  %v4707_v45 = vcombine.high %v1228_v35, %v5950_v6  ;;  %v2013_v1 = vcombine.low %v1237_v26, %v5953_v8  ;;  %v4711_v31 = vcombine.high %v1237_v26, %v5953_v8  ;;  %v620_v6 = vpop.permute.xlu1 %619  ;;  %v618_v35 = vpop.permute.xlu0 %617 }
 0x246   : > { %v2149_v38 = vcombine.low %v1244_v12, %v5956_v15  ;;  %v4715_v4 = vcombine.high %v1244_v12, %v5956_v15  ;;  %v6402_v37 = vrot.slane %v1741_v60, %v5790_v47  ;;  %v6405_v44 = vrot.slane %v4703_v40, %v5790_v47 }
 0x247   : > { %v6408_v2 = vrot.slane %v1877_v39, %v5790_v47  ;;  %v6411_v18 = vrot.slane %v4707_v45, %v5790_v47  ;;  %v6414_v8 = vrot.slane %v2013_v1, %v5790_v47  ;;  %v6417_v26 = vrot.slane %v4711_v31, %v5790_v47  ;;  %v7321_v39 = vld [vmem:[#allocation14_spill] sm:$0xff]  ;;  %v7322_v31 = vld [vmem:[#allocation15_spill] sm:$0xff] }
 0x248   : > { %v6420_v15 = vrot.slane %v2149_v38, %v5790_v47  ;;  %v6423_v12 = vrot.slane %v4715_v4, %v5790_v47  ;;  %v1401_v0 = vcombine.low %v6249_v30, %v612_v55  ;;  %v1402_v52 = vcombine.high %v6249_v30, %v612_v55 }
 0x249   : > { %v1333_v60 = vcombine.low %v6251_v27, %v610_v7  ;;  %v1334_v40 = vcombine.high %v6251_v27, %v610_v7  ;;  %v1673_v45 = vcombine.low %v7321_v39, %v620_v6  ;;  %v1674_v1 = vcombine.high %v7321_v39, %v620_v6 }
 0x24a   : > { %v1605_v33 = vcombine.low %v7322_v31, %v618_v35  ;;  %v1606_v38 = vcombine.high %v7322_v31, %v618_v35  ;;  %v1409_v25 = vrot.slane %v1401_v0, %v5790_v47  ;;  %v1416_v4 = vrot.slane %v1402_v52, %v5790_v47 }
 0x24b   : > { %v1341_v17 = vrot.slane %v1333_v60, %v5790_v47  ;;  %v1348_v30 = vrot.slane %v1334_v40, %v5790_v47  ;;  %v1681_v55 = vrot.slane %v1673_v45, %v5790_v47  ;;  %v1688_v27 = vrot.slane %v1674_v1, %v5790_v47 }
 0x24c   : > { %v1613_v7 = vrot.slane %v1605_v33, %v5790_v47  ;;  %v1620_v6 = vrot.slane %v1606_v38, %v5790_v47  ;;  %v1417_v39 = vcombine.low %v6342_v51, %v1409_v25  ;;  %v1418_v35 = vcombine.high %v6342_v51, %v1409_v25 }
 0x24d   : > { %v1433_v0 = vcombine.low %v6345_v61, %v1416_v4  ;;  %v1434_v52 = vcombine.high %v6345_v61, %v1416_v4  ;;  %v1349_v60 = vcombine.low %v6348_v36, %v1341_v17  ;;  %v1350_v40 = vcombine.high %v6348_v36, %v1341_v17 }
 0x24e   : > { %v1365_v45 = vcombine.low %v6351_v46, %v1348_v30  ;;  %v1366_v1 = vcombine.high %v6351_v46, %v1348_v30  ;;  %v1425_v33 = vrot.slane %v1417_v39, %v5865_v5  ;;  %v1432_v31 = vrot.slane %v1418_v35, %v5865_v5  ;;  %v7323_v46 = vld [vmem:[#allocation16_spill] sm:$0xff]  ;;  %v7324_v39 = vld [vmem:[#allocation17_spill] sm:$0xff] }
 0x24f   : > { %v1441_v38 = vrot.slane %v1433_v0, %v5865_v5  ;;  %v1448_v25 = vrot.slane %v1434_v52, %v5865_v5  ;;  %v6454_v51 = vrot.slane %v1349_v60, %v5865_v5  ;;  %v6457_v61 = vrot.slane %v1350_v40, %v5865_v5  ;;  %v7325_v52 = vld [vmem:[#allocation18_spill] sm:$0xff]  ;;  %v7326_v40 = vld [vmem:[#allocation19_spill] sm:$0xff] }
 0x250   : > { %v6460_v17 = vrot.slane %v1365_v45, %v5865_v5  ;;  %v6463_v36 = vrot.slane %v1366_v1, %v5865_v5  ;;  %v1689_v4 = vcombine.low %v7323_v46, %v1681_v55  ;;  %v1690_v30 = vcombine.high %v7323_v46, %v1681_v55 }
 0x251   : > { %v1705_v35 = vcombine.low %v7324_v39, %v1688_v27  ;;  %v1706_v0 = vcombine.high %v7324_v39, %v1688_v27  ;;  %v1621_v60 = vcombine.low %v7325_v52, %v1613_v7  ;;  %v1622_v63 = vcombine.high %v7325_v52, %v1613_v7 }
 0x252   : > { %v1637_v32 = vcombine.low %v7326_v40, %v1620_v6  ;;  %v1638_v45 = vcombine.high %v7326_v40, %v1620_v6  ;;  %v1697_v56 = vrot.slane %v1689_v4, %v5865_v5  ;;  %v1704_v1 = vrot.slane %v1690_v30, %v5865_v5 }
 0x253   : > { %v1713_v42 = vrot.slane %v1705_v35, %v5865_v5  ;;  %v1720_v55 = vrot.slane %v1706_v0, %v5865_v5  ;;  %v1629_v46 = vrot.slane %v1621_v60, %v5865_v5  ;;  %v6479_v27 = vrot.slane %v1622_v63, %v5865_v5 }
 0x254   : > { %v6482_v39 = vrot.slane %v1637_v32, %v5865_v5  ;;  %v6485_v7 = vrot.slane %v1638_v45, %v5865_v5  ;;  %v2293_v6 = vcombine.low %v1425_v33, %v1697_v56  ;;  %v4720_v52 = vcombine.high %v1425_v33, %v1697_v56 }
 0x255   : > { %v2429_v4 = vcombine.low %v1432_v31, %v1704_v1  ;;  %v4724_v40 = vcombine.high %v1432_v31, %v1704_v1  ;;  %v2565_v30 = vcombine.low %v1441_v38, %v1713_v42  ;;  %v4728_v9 = vcombine.high %v1441_v38, %v1713_v42 }
 0x256   : > { %v2701_v35 = vcombine.low %v1448_v25, %v1720_v55  ;;  %v4732_v43 = vcombine.high %v1448_v25, %v1720_v55  ;;  %v2300_v0 = vrot.slane %v2293_v6, %v5790_v47  ;;  %v2368_v60 = vrot.slane %v4720_v52, %v5790_v47 }
 0x257   : > { %v2436_v63 = vrot.slane %v2429_v4, %v5790_v47  ;;  %v2504_v32 = vrot.slane %v4724_v40, %v5790_v47  ;;  %v2572_v53 = vrot.slane %v2565_v30, %v5790_v47  ;;  %v2640_v45 = vrot.slane %v4728_v9, %v5790_v47 }
 0x258   : > { %v2708_v56 = vrot.slane %v2701_v35, %v5790_v47  ;;  %v2776_v33 = vrot.slane %v4732_v43, %v5790_v47  ;;  %v2317_v42 = vcombine.low %v6370_v10, %v2300_v0  ;;  %v2318_v31 = vcombine.high %v6370_v10, %v2300_v0 }
 0x259   : > { %v2385_v38 = vcombine.low %v6373_v59, %v2368_v60  ;;  %v2386_v25 = vcombine.high %v6373_v59, %v2368_v60  ;;  %v2453_v1 = vcombine.low %v6376_v49, %v2436_v63  ;;  %v2454_v55 = vcombine.high %v6376_v49, %v2436_v63 }
 0x25a   : > { %v2521_v6 = vcombine.low %v6379_v13, %v2504_v32  ;;  %v2522_v9 = vcombine.high %v6379_v13, %v2504_v32  ;;  %v6504_v52 = vrot.slane %v2317_v42, %v5865_v5  ;;  %v6507_v43 = vrot.slane %v2318_v31, %v5865_v5 }
 0x25b   : > { %v6510_v10 = vrot.slane %v2385_v38, %v5865_v5  ;;  %v6513_v4 = vrot.slane %v2386_v25, %v5865_v5  ;;  %v6516_v59 = vrot.slane %v2453_v1, %v5865_v5  ;;  %v6519_v49 = vrot.slane %v2454_v55, %v5865_v5 }
 0x25c   : > { %7327 = vst [vmem:[#allocation14_spill] sm:$0xff] %v6504_v52  ;;  %7328 = vst [vmem:[#allocation15_spill] sm:$0xff] %v6507_v43  ;;  %v6522_v13 = vrot.slane %v2521_v6, %v5865_v5  ;;  %v6525_v40 = vrot.slane %v2522_v9, %v5865_v5  ;;  %v2589_v30 = vcombine.low %v6382_v3, %v2572_v53 }
 0x25d   : > { %7329 = vst [vmem:[#allocation16_spill] sm:$0xff] %v6510_v10  ;;  %7330 = vst [vmem:[#allocation17_spill] sm:$0xff] %v6513_v4  ;;  %v2590_v35 = vcombine.high %v6382_v3, %v2572_v53  ;;  %v2657_v0 = vcombine.low %v6385_v28, %v2640_v45  ;;  %v2658_v60 = vcombine.high %v6385_v28, %v2640_v45 }
 0x25e   : > { %7331 = vst [vmem:[#allocation18_spill] sm:$0xff] %v6516_v59  ;;  %7332 = vst [vmem:[#allocation19_spill] sm:$0xff] %v6519_v49  ;;  %v2725_v63 = vcombine.low %v6388_v14, %v2708_v56  ;;  %v2726_v32 = vcombine.high %v6388_v14, %v2708_v56  ;;  %v2793_v42 = vcombine.low %v6391_v34, %v2776_v33 }
 0x25f   : > { %7333 = vst [vmem:[#allocation36_spill] sm:$0xff] %v6522_v13  ;;  %7334 = vst [vmem:[#allocation37_spill] sm:$0xff] %v6525_v40  ;;  %v2794_v31 = vcombine.high %v6391_v34, %v2776_v33  ;;  %v6536_v38 = vrot.slane %v2589_v30, %v5865_v5  ;;  %v6539_v25 = vrot.slane %v2590_v35, %v5865_v5 }
 0x260   : > { %v6542_v53 = vrot.slane %v2657_v0, %v5865_v5  ;;  %v6545_v3 = vrot.slane %v2658_v60, %v5865_v5  ;;  %v6548_v28 = vrot.slane %v2725_v63, %v5865_v5  ;;  %v6551_v14 = vrot.slane %v2726_v32, %v5865_v5 }
 0x261   : > { %7335 = vst [vmem:[#allocation38_spill] sm:$0xff] %v6536_v38  ;;  %7336 = vst [vmem:[#allocation39_spill] sm:$0xff] %v6539_v25  ;;  %v6554_v34 = vrot.slane %v2793_v42, %v5865_v5  ;;  %v6557_v45 = vrot.slane %v2794_v31, %v5865_v5  ;;  %v1749_v56 = vcombine.low %v6454_v51, %v1629_v46  ;;  %v7372_v38 = vld [vmem:[#allocation26_spill] sm:$0xff] }
 0x262   : > { %7337 = vst [vmem:[#allocation40_spill] sm:$0xff] %v6542_v53  ;;  %7338 = vst [vmem:[#allocation41_spill] sm:$0xff] %v6545_v3  ;;  %v4704_v33 = vcombine.high %v6454_v51, %v1629_v46  ;;  %v1885_v1 = vcombine.low %v6457_v61, %v6479_v27  ;;  %v4708_v55 = vcombine.high %v6457_v61, %v6479_v27 }
 0x263   : > { %7339 = vst [vmem:[#allocation42_spill] sm:$0xff] %v6548_v28  ;;  %7340 = vst [vmem:[#allocation43_spill] sm:$0xff] %v6551_v14  ;;  %v2021_v6 = vcombine.low %v6460_v17, %v6482_v39  ;;  %v4712_v9 = vcombine.high %v6460_v17, %v6482_v39  ;;  %v2157_v30 = vcombine.low %v6463_v36, %v6485_v7  ;;  %v7373_v28 = vld [vmem:[#allocation24_spill] sm:$0xff] }
 0x264   : > { %7341 = vst [vmem:[#allocation44_spill] sm:$0xff] %v6554_v34  ;;  %7342 = vst [vmem:[#allocation45_spill] sm:$0xff] %v6557_v45  ;;  %v4716_v35 = vcombine.high %v6463_v36, %v6485_v7  ;;  %v1756_v51 = vrot.slane %v1749_v56, %v5790_v47  ;;  %v1824_v46 = vrot.slane %v4704_v33, %v5790_v47 }
 0x265   : > { %v1892_v0 = vrot.slane %v1885_v1, %v5790_v47  ;;  %v1960_v61 = vrot.slane %v4708_v55, %v5790_v47  ;;  %v2028_v27 = vrot.slane %v2021_v6, %v5790_v47  ;;  %v2096_v60 = vrot.slane %v4712_v9, %v5790_v47 }
 0x266   : > { %v2164_v17 = vrot.slane %v2157_v30, %v5790_v47  ;;  %v2232_v39 = vrot.slane %v4716_v35, %v5790_v47  ;;  %v1773_v63 = vcombine.low %v6402_v37, %v1756_v51  ;;  %v1774_v36 = vcombine.high %v6402_v37, %v1756_v51 }
 0x267   : > { %v1841_v7 = vcombine.low %v6405_v44, %v1824_v46  ;;  %v1842_v32 = vcombine.high %v6405_v44, %v1824_v46  ;;  %v1909_v42 = vcombine.low %v6408_v2, %v1892_v0  ;;  %v1910_v31 = vcombine.high %v6408_v2, %v1892_v0 }
 0x268   : > { %v1977_v56 = vcombine.low %v6411_v18, %v1960_v61  ;;  %v1978_v33 = vcombine.high %v6411_v18, %v1960_v61  ;;  %v6590_v1 = vrot.slane %v1773_v63, %v5865_v5  ;;  %v6593_v55 = vrot.slane %v1774_v36, %v5865_v5 }
 0x269   : > { %v6596_v37 = vrot.slane %v1841_v7, %v5865_v5  ;;  %v6599_v6 = vrot.slane %v1842_v32, %v5865_v5  ;;  %v6602_v44 = vrot.slane %v1909_v42, %v5865_v5  ;;  %v6605_v2 = vrot.slane %v1910_v31, %v5865_v5 }
 0x26a   : > { %7343 = vst [vmem:[#allocation46_spill] sm:$0xff] %v6593_v55  ;;  %v6608_v18 = vrot.slane %v1977_v56, %v5865_v5  ;;  %v6611_v9 = vrot.slane %v1978_v33, %v5865_v5  ;;  %v2045_v30 = vcombine.low %v6414_v8, %v2028_v27  ;;  %v2046_v35 = vcombine.high %v6414_v8, %v2028_v27 }
 0x26b   : > { %7344 = vst [vmem:[#allocation47_spill] sm:$0xff] %v6596_v37  ;;  %7345 = vst [vmem:[#allocation48_spill] sm:$0xff] %v6599_v6  ;;  %v2113_v51 = vcombine.low %v6417_v26, %v2096_v60  ;;  %v2114_v46 = vcombine.high %v6417_v26, %v2096_v60  ;;  %v2181_v0 = vcombine.low %v6420_v15, %v2164_v17 }
 0x26c   : > { %7346 = vst [vmem:[#allocation49_spill] sm:$0xff] %v6605_v2  ;;  %7347 = vst [vmem:[#allocation50_spill] sm:$0xff] %v6611_v9  ;;  %v2182_v61 = vcombine.high %v6420_v15, %v2164_v17  ;;  %v2249_v63 = vcombine.low %v6423_v12, %v2232_v39  ;;  %v2250_v36 = vcombine.high %v6423_v12, %v2232_v39  ;;  %v7370_v2 = vld [vmem:[#allocation23_spill] sm:$0xff] }
 0x26d   : > { %v6622_v7 = vrot.slane %v2045_v30, %v5865_v5  ;;  %v6625_v32 = vrot.slane %v2046_v35, %v5865_v5  ;;  %v6628_v8 = vrot.slane %v2113_v51, %v5865_v5  ;;  %v6631_v27 = vrot.slane %v2114_v46, %v5865_v5 }
 0x26e   : > { %v6634_v26 = vrot.slane %v2181_v0, %v5865_v5  ;;  %v6637_v15 = vrot.slane %v2182_v61, %v5865_v5  ;;  %v6640_v12 = vrot.slane %v2249_v63, %v5865_v5  ;;  %v6643_v60 = vrot.slane %v2250_v36, %v5865_v5 }
 0x26f   : > { %7348 = vst [vmem:[#allocation51_spill] sm:$0xff] %v6622_v7  ;;  %7349 = vst [vmem:[#allocation52_spill] sm:$0xff] %v6625_v32  ;;  %v4733_v17 = vcombine.low %v6254_v41, %v6266_v54  ;;  %v4735_v39 = vcombine.low %v6260_v16, %v6272_v57  ;;  %v4737_v42 = vcombine.low %v6286_v62, %v6298_v29  ;;  %v7366_v32 = vld [vmem:[#allocation35_spill] sm:$0xff] }
 0x270   : > { %7350 = vst [vmem:[#allocation53_spill] sm:$0xff] %v6628_v8  ;;  %7351 = vst [vmem:[#allocation54_spill] sm:$0xff] %v6631_v27  ;;  %v4739_v31 = vcombine.low %v6292_v50, %v6304_v24  ;;  %v4741_v56 = vcombine.low %v6158_v19, %v6170_v21  ;;  %v4743_v33 = vcombine.low %v6164_v20, %v6176_v22  ;;  %v7365_v27 = vld [vmem:[#allocation32_spill] sm:$0xff] }
 0x271   : > { %7352 = vst [vmem:[#allocation55_spill] sm:$0xff] %v6634_v26  ;;  %7353 = vst [vmem:[#allocation56_spill] sm:$0xff] %v6637_v15  ;;  %v4745_v30 = vcombine.low %v6190_v48, %v6202_v58  ;;  %v4747_v35 = vcombine.low %v6196_v11, %v6208_v23  ;;  %v2821_v51 = vrot.slane %v4733_v17, %v5790_v47  ;;  %v7369_v15 = vld [vmem:[#allocation20_spill] sm:$0xff] }
 0x272   : > { %7354 = vst [vmem:[#allocation57_spill] sm:$0xff] %v6640_v12  ;;  %7355 = vst [vmem:[#allocation58_spill] sm:$0xff] %v6643_v60  ;;  %v2837_v46 = vrot.slane %v4735_v39, %v5790_v47  ;;  %v2853_v0 = vrot.slane %v4737_v42, %v5790_v47  ;;  %v2869_v61 = vrot.slane %v4739_v31, %v5790_v47 }
 0x273   : > { %v2957_v63 = vrot.slane %v4741_v56, %v5790_v47  ;;  %v2973_v36 = vrot.slane %v4743_v33, %v5790_v47  ;;  %v2989_v3 = vrot.slane %v4745_v30, %v5790_v47  ;;  %v3005_v45 = vrot.slane %v4747_v35, %v5790_v47 }
 0x274   : > { %v2878_v25 = vcombine.high %v2821_v51, %v2837_v46  ;;  %v2910_v14 = vcombine.high %v2853_v0, %v2869_v61  ;;  %v2877_v4 = vcombine.low %v2821_v51, %v2837_v46  ;;  %v2909_v40 = vcombine.low %v2853_v0, %v2869_v61  ;;  %v7362_v61 = vld [vmem:[#allocation31_spill] sm:$0xff] }
 0x275   : > { %v3014_v43 = vcombine.high %v2957_v63, %v2973_v36  ;;  %v3046_v17 = vcombine.high %v2989_v3, %v3005_v45  ;;  %v3013_v49 = vcombine.low %v2957_v63, %v2973_v36  ;;  %v3045_v39 = vcombine.low %v2989_v3, %v3005_v45  ;;  %v7363_v63 = vld [vmem:[#allocation29_spill] sm:$0xff] }
 0x276   : > { %v2892_v42 = vrot.slane %v2878_v25, %v5865_v5  ;;  %v2924_v31 = vrot.slane %v2910_v14, %v5865_v5  ;;  %v6672_v56 = vrot.slane %v2877_v4, %v5865_v5  ;;  %v6675_v33 = vrot.slane %v2909_v40, %v5865_v5  ;;  %v7360_v14 = vld [vmem:[#allocation30_spill] sm:$0xff]  ;;  %v7361_v40 = vld [vmem:[#allocation28_spill] sm:$0xff]  ;;  %v7367_v4 = vld [vmem:[#allocation33_spill] sm:$0xff] }
 0x277   : > { %v3028_v30 = vrot.slane %v3014_v43, %v5865_v5  ;;  %v3060_v35 = vrot.slane %v3046_v17, %v5865_v5  ;;  %v6680_v51 = vrot.slane %v3013_v49, %v5865_v5  ;;  %v6683_v46 = vrot.slane %v3045_v39, %v5865_v5  ;;  %v7364_v39 = vld [vmem:[#allocation34_spill] sm:$0xff] }
 0x278   : > { %7356 = vst [vmem:[#allocation59_spill] sm:$0xff] %v6672_v56  ;;  %7357 = vst [vmem:[#allocation60_spill] sm:$0xff] %v6675_v33  ;;  %v2943_v3 = vcombine.low %v2892_v42, %v2924_v31  ;;  %v2942_v25 = vcombine.high %v6672_v56, %v6675_v33  ;;  %v4765_v45 = vcombine.low %v7361_v40, %v7360_v14  ;;  %v7368_v56 = vld [vmem:[#allocation22_spill] sm:$0xff] }
 0x279   : > { %7358 = vst [vmem:[#allocation61_spill] sm:$0xff] %v6680_v51  ;;  %7359 = vst [vmem:[#allocation62_spill] sm:$0xff] %v6683_v46  ;;  %v3079_v0 = vcombine.low %v3028_v30, %v3060_v35  ;;  %v3078_v49 = vcombine.high %v6680_v51, %v6683_v46  ;;  %v4767_v36 = vcombine.low %v7363_v63, %v7362_v61  ;;  %v7371_v46 = vld [vmem:[#allocation21_spill] sm:$0xff] }
 0x27a   : > { %v3365_v17 = vrot.slane %v4765_v45, %v5790_v47  ;;  %v4769_v60 = vcombine.low %v7365_v27, %v7364_v39  ;;  %v4771_v33 = vcombine.low %v7367_v4, %v7366_v32  ;;  %v4773_v6 = vcombine.low %v7369_v15, %v7368_v56 }
 0x27b   : > { %v5047_v9 = vpack.i.bf16 %v3079_v0, %v2943_v3  ;;  %v5042_v55 = vpack.i.bf16 %v3078_v49, %v2942_v25  ;;  %v3381_v43 = vrot.slane %v4767_v36, %v5790_v47  ;;  %v4775_v51 = vcombine.low %v7371_v46, %v7370_v2  ;;  %v7374_v0 = vld [vmem:[#allocation27_spill] sm:$0xff]  ;;  %v7375_v49 = vld [vmem:[#allocation25_spill] sm:$0xff] }
 0x27c   : > { %v3397_v53 = vrot.slane %v4769_v60, %v5790_v47  ;;  %v3413_v45 = vrot.slane %v4771_v33, %v5790_v47  ;;  %v3501_v34 = vrot.slane %v4773_v6, %v5790_v47  ;;  %v4777_v10 = vcombine.low %v7373_v28, %v7372_v38 }
 0x27d   : > { %5048 = vrot.lane.b32.xlu1 %v5047_v9, %s5372_s8  ;;  %5043 = vrot.lane.b32.xlu0 %v5042_v55, %s5373_s10  ;;  %v3421_v3 = vcombine.low %v3365_v17, %v3381_v43  ;;  %v3517_v25 = vrot.slane %v4775_v51, %v5790_v47  ;;  %v4779_v36 = vcombine.low %v7375_v49, %v7374_v0 }
 0x27e   : > { %v3453_v60 = vcombine.low %v3397_v53, %v3413_v45  ;;  %v3533_v33 = vrot.slane %v4777_v10, %v5790_v47  ;;  %v2944_v13 = vcombine.high %v2892_v42, %v2924_v31  ;;  %v3080_v6 = vcombine.high %v3028_v30, %v3060_v35 }
 0x27f   : > { %v6719_v52 = vrot.slane %v3421_v3, %v5865_v5  ;;  %v3549_v59 = vrot.slane %v4779_v36, %v5790_v47  ;;  %v3557_v9 = vcombine.low %v3501_v34, %v3517_v25  ;;  %v3422_v8 = vcombine.high %v3365_v17, %v3381_v43 }
 0x280   : > { %v6723_v55 = vrot.slane %v3453_v60, %v5865_v5  ;;  %v5052_v12 = vpack.i.bf16 %v3080_v6, %v2944_v13  ;;  %v3454_v51 = vcombine.high %v3397_v53, %v3413_v45  ;;  %v3558_v7 = vcombine.high %v3501_v34, %v3517_v25 }
 0x281   : > { %v6726_v26 = vrot.slane %v3557_v9, %v5865_v5  ;;  %v3589_v37 = vcombine.low %v3533_v33, %v3549_v59  ;;  %v3436_v10 = vrot.slane %v3422_v8, %v5865_v5  ;;  %v3590_v42 = vcombine.high %v3533_v33, %v3549_v59 }
 0x282   : > { %v3486_v31 = vcombine.high %v6719_v52, %v6723_v55  ;;  %v3485_v30 = vcombine.low %v6719_v52, %v6723_v55  ;;  %5053 = vrot.lane.b32.xlu0 %v5052_v12, %s5374_s24  ;;  %v3468_v13 = vrot.slane %v3454_v51, %v5865_v5  ;;  %v3572_v53 = vrot.slane %v3558_v7, %v5865_v5 }
 0x283   : > { %v6737_v34 = vrot.slane %v3589_v37, %v5865_v5  ;;  %v3604_v35 = vrot.slane %v3590_v42, %v5865_v5  ;;  %v4749_v59 = vcombine.high %v6254_v41, %v6266_v54  ;;  %v4751_v8 = vcombine.high %v6260_v16, %v6272_v57 }
 0x284   : > { %v3487_v43 = vcombine.low %v3436_v10, %v3468_v13  ;;  %v4753_v17 = vcombine.high %v6286_v62, %v6298_v29  ;;  %v4755_v12 = vcombine.high %v6292_v50, %v6304_v24  ;;  %v4757_v7 = vcombine.high %v6158_v19, %v6170_v21 }
 0x285   : > { %v3621_v37 = vcombine.low %v6726_v26, %v6737_v34  ;;  %v3622_v45 = vcombine.high %v6726_v26, %v6737_v34  ;;  %v3623_v41 = vcombine.low %v3572_v53, %v3604_v35  ;;  %v3093_v54 = vrot.slane %v4749_v59, %v5790_v47 }
 0x286   : > { %v3109_v16 = vrot.slane %v4751_v8, %v5790_v47  ;;  %v3125_v57 = vrot.slane %v4753_v17, %v5790_v47  ;;  %v3141_v62 = vrot.slane %v4755_v12, %v5790_v47  ;;  %v3229_v50 = vrot.slane %v4757_v7, %v5790_v47 }
 0x287   : > { %v5072_v29 = vpack.i.bf16 %v3622_v45, %v3486_v31  ;;  %v5077_v24 = vpack.i.bf16 %v3623_v41, %v3487_v43  ;;  %v4759_v19 = vcombine.high %v6164_v20, %v6176_v22  ;;  %v4761_v21 = vcombine.high %v6190_v48, %v6202_v58 }
 0x288   : > { %v3149_v3 = vcombine.low %v3093_v54, %v3109_v16  ;;  %v3181_v25 = vcombine.low %v3125_v57, %v3141_v62  ;;  %v4763_v36 = vcombine.high %v6196_v11, %v6208_v23  ;;  %v3488_v60 = vcombine.high %v3436_v10, %v3468_v13 }
 0x289   : > { %5073 = vrot.lane.b32.xlu1 %v5072_v29, %s5373_s10  ;;  %v3245_v33 = vrot.slane %v4759_v19, %v5790_v47  ;;  %v3261_v6 = vrot.slane %v4761_v21, %v5790_v47  ;;  %v3624_v9 = vcombine.high %v3572_v53, %v3604_v35  ;;  %v3150_v51 = vcombine.high %v3093_v54, %v3109_v16 }
 0x28a   : > { %v6769_v42 = vrot.slane %v3149_v3, %v5865_v5  ;;  %v6772_v20 = vrot.slane %v3181_v25, %v5865_v5  ;;  %v3277_v22 = vrot.slane %v4763_v36, %v5790_v47  ;;  %v3182_v48 = vcombine.high %v3125_v57, %v3141_v62 }
 0x28b   : > { %v3285_v58 = vcombine.low %v3229_v50, %v3245_v33  ;;  %v5082_v11 = vpack.i.bf16 %v3624_v9, %v3488_v60  ;;  %v3164_v23 = vrot.slane %v3150_v51, %v5865_v5  ;;  %v3286_v10 = vcombine.high %v3229_v50, %v3245_v33 }
 0x28c   : > { %v3214_v31 = vcombine.high %v6769_v42, %v6772_v20  ;;  %v3317_v13 = vcombine.low %v3261_v6, %v3277_v22  ;;  %v3213_v53 = vcombine.low %v6769_v42, %v6772_v20  ;;  %v3196_v35 = vrot.slane %v3182_v48, %v5865_v5 }
 0x28d   : > { %5078 = vrot.lane.b32.xlu1 %v5077_v24, %s5372_s8  ;;  %v6783_v59 = vrot.slane %v3285_v58, %v5865_v5  ;;  %v3300_v8 = vrot.slane %v3286_v10, %v5865_v5  ;;  %v3318_v43 = vcombine.high %v3261_v6, %v3277_v22  ;;  %v4781_v17 = vcombine.high %v7361_v40, %v7360_v14 }
 0x28e   : > { %v6789_v12 = vrot.slane %v3317_v13, %v5865_v5  ;;  %v3215_v7 = vcombine.low %v3164_v23, %v3196_v35  ;;  %v3216_v45 = vcombine.high %v3164_v23, %v3196_v35  ;;  %v4783_v41 = vcombine.high %v7363_v63, %v7362_v61 }
 0x28f   : > { %v3332_v54 = vrot.slane %v3318_v43, %v5865_v5  ;;  %v3637_v16 = vrot.slane %v4781_v17, %v5790_v47  ;;  %v4785_v57 = vcombine.high %v7365_v27, %v7364_v39  ;;  %v4787_v62 = vcombine.high %v7367_v4, %v7366_v32  ;;  %v7377_v17 = vld [vmem:[#allocation55_spill] sm:$0xff] }
 0x290   : > { %v3349_v14 = vcombine.low %v6783_v59, %v6789_v12  ;;  %v3350_v40 = vcombine.high %v6783_v59, %v6789_v12  ;;  %v3653_v50 = vrot.slane %v4783_v41, %v5790_v47  ;;  %v4789_v61 = vcombine.high %v7369_v15, %v7368_v56 }
 0x291   : > { %5083 = vrot.lane.b32.xlu1 %v5082_v11, %s5374_s24  ;;  %v3351_v63 = vcombine.low %v3300_v8, %v3332_v54  ;;  %v3352_v29 = vcombine.high %v3300_v8, %v3332_v54  ;;  %v3669_v27 = vrot.slane %v4785_v57, %v5790_v47  ;;  %v3685_v39 = vrot.slane %v4787_v62, %v5790_v47  ;;  %v7376_v8 = vld [vmem:[#allocation47_spill] sm:$0xff]  ;;  %v7380_v57 = vld [vmem:[#allocation53_spill] sm:$0xff] }
 0x292   : > { %v5057_v32 = vpack.i.bf16 %v3350_v40, %v3214_v31  ;;  %v3693_v4 = vcombine.low %v3637_v16, %v3653_v50  ;;  %v3773_v24 = vrot.slane %v4789_v61, %v5790_v47  ;;  %v4791_v19 = vcombine.high %v7371_v46, %v7370_v2  ;;  %v7381_v40 = vld [vmem:[#allocation18_spill] sm:$0xff] }
 0x293   : > { %v5062_v21 = vpack.i.bf16 %v3351_v63, %v3215_v7  ;;  %v5067_v3 = vpack.i.bf16 %v3352_v29, %v3216_v45  ;;  %v3725_v25 = vcombine.low %v3669_v27, %v3685_v39  ;;  %v4793_v15 = vcombine.high %v7373_v28, %v7372_v38  ;;  %v7378_v7 = vld [vmem:[#allocation51_spill] sm:$0xff] }
 0x294   : > { %5058 = vrot.lane.b32.xlu0 %v5057_v32, %s5373_s10  ;;  %v6816_v56 = vrot.slane %v3693_v4, %v5865_v5  ;;  %v3789_v36 = vrot.slane %v4791_v19, %v5790_v47  ;;  %v4795_v60 = vcombine.high %v7375_v49, %v7374_v0  ;;  %v3694_v33 = vcombine.high %v3637_v16, %v3653_v50  ;;  %v7379_v16 = vld [vmem:[#allocation57_spill] sm:$0xff]  ;;  %v7382_v50 = vld [vmem:[#allocation14_spill] sm:$0xff] }
 0x295   : > { %v6822_v6 = vrot.slane %v3725_v25, %v5865_v5  ;;  %v3805_v2 = vrot.slane %v4793_v15, %v5790_v47  ;;  %v3726_v46 = vcombine.high %v3669_v27, %v3685_v39  ;;  %v4734_v38 = vcombine.low %v6590_v1, %v6602_v44  ;;  %v7383_v27 = vld [vmem:[#allocation36_spill] sm:$0xff]  ;;  %v7385_v4 = vld [vmem:[#allocation42_spill] sm:$0xff] }
 0x296   : > { %v3821_v28 = vrot.slane %v4795_v60, %v5790_v47  ;;  %v3829_v9 = vcombine.low %v3773_v24, %v3789_v36  ;;  %v3708_v51 = vrot.slane %v3694_v33, %v5865_v5  ;;  %v3830_v22 = vcombine.high %v3773_v24, %v3789_v36  ;;  %v7384_v39 = vld [vmem:[#allocation16_spill] sm:$0xff]  ;;  %v7386_v24 = vld [vmem:[#allocation38_spill] sm:$0xff] }
 0x297   : > { %v3758_v48 = vcombine.high %v6816_v56, %v6822_v6  ;;  %v3757_v0 = vcombine.low %v6816_v56, %v6822_v6  ;;  %v3740_v49 = vrot.slane %v3726_v46, %v5865_v5  ;;  %v6835_v58 = vrot.slane %v4734_v38, %v5790_v47 }
 0x298   : > { %5063 = vrot.lane.b32.xlu0 %v5062_v21, %s5372_s8  ;;  %v6839_v11 = vrot.slane %v3829_v9, %v5865_v5  ;;  %v3861_v23 = vcombine.low %v3805_v2, %v3821_v28  ;;  %v3844_v10 = vrot.slane %v3830_v22, %v5865_v5  ;;  %v3862_v31 = vcombine.high %v3805_v2, %v3821_v28 }
 0x299   : > { %v3759_v13 = vcombine.low %v3708_v51, %v3740_v49  ;;  %v3760_v35 = vcombine.high %v3708_v51, %v3740_v49  ;;  %v4736_v43 = vcombine.low %v7376_v8, %v6608_v18  ;;  %v4738_v45 = vcombine.low %v7378_v7, %v7377_v17  ;;  %v7387_v49 = vld [vmem:[#allocation44_spill] sm:$0xff] }
 0x29a   : > { %v6847_v41 = vrot.slane %v3861_v23, %v5865_v5  ;;  %v3876_v54 = vrot.slane %v3862_v31, %v5865_v5  ;;  %v4740_v62 = vcombine.low %v7380_v57, %v7379_v16  ;;  %v4742_v61 = vcombine.low %v7382_v50, %v7381_v40  ;;  %v7388_v23 = vld [vmem:[#allocation40_spill] sm:$0xff] }
 0x29b   : > { %v2844_v63 = vrot.slane %v4736_v43, %v5790_v47  ;;  %v6856_v29 = vrot.slane %v4738_v45, %v5790_v47  ;;  %v4744_v32 = vcombine.low %v7384_v39, %v7383_v27  ;;  %v4746_v19 = vcombine.low %v7386_v24, %v7385_v4 }
 0x29c   : > { %5068 = vrot.lane.b32.xlu0 %v5067_v3, %s5374_s24  ;;  %v3893_v21 = vcombine.low %v6839_v11, %v6847_v41  ;;  %v3894_v25 = vcombine.high %v6839_v11, %v6847_v41  ;;  %v3895_v15 = vcombine.low %v3844_v10, %v3876_v54  ;;  %v3896_v36 = vcombine.high %v3844_v10, %v3876_v54 }
 0x29d   : > { %v2876_v60 = vrot.slane %v4740_v62, %v5790_v47  ;;  %v2893_v33 = vcombine.low %v6835_v58, %v2844_v63  ;;  %v2964_v2 = vrot.slane %v4742_v61, %v5790_v47  ;;  %v2980_v46 = vrot.slane %v4744_v32, %v5790_v47 }
 0x29e   : > { %v5087_v38 = vpack.i.bf16 %v3894_v25, %v3758_v48  ;;  %v5092_v28 = vpack.i.bf16 %v3895_v15, %v3759_v13  ;;  %v5097_v9 = vpack.i.bf16 %v3896_v36, %v3760_v35  ;;  %v2996_v3 = vrot.slane %v4746_v19, %v5790_v47 }
 0x29f   : > { %v2901_v51 = vrot.slane %v2893_v33, %v5865_v5  ;;  %v2925_v22 = vcombine.low %v6856_v29, %v2876_v60  ;;  %v4748_v10 = vcombine.low %v7388_v23, %v7387_v49  ;;  %v3029_v31 = vcombine.low %v2964_v2, %v2980_v46 }
 0x2a0   : > { %5088 = vrot.lane.b32.xlu0 %v5087_v38, %s5373_s10  ;;  %v4750_v43 = vcombine.high %v6590_v1, %v6602_v44  ;;  %v4752_v48 = vcombine.high %v7376_v8, %v6608_v18  ;;  %v4754_v13 = vcombine.high %v7378_v7, %v7377_v17  ;;  %v4756_v35 = vcombine.high %v7380_v57, %v7379_v16 }
 0x2a1   : > { %v2933_v45 = vrot.slane %v2925_v22, %v5865_v5  ;;  %v3012_v54 = vrot.slane %v4748_v10, %v5790_v47  ;;  %v3037_v62 = vrot.slane %v3029_v31, %v5865_v5  ;;  %v4758_v61 = vcombine.high %v7382_v50, %v7381_v40 }
 0x2a2   : > { %v3100_v1 = vrot.slane %v4750_v43, %v5790_v47  ;;  %v3116_v44 = vrot.slane %v4752_v48, %v5790_v47  ;;  %v3132_v18 = vrot.slane %v4754_v13, %v5790_v47  ;;  %v3148_v8 = vrot.slane %v4756_v35, %v5790_v47 }
 0x2a3   : > { %v2945_v17 = vcombine.low %v2901_v51, %v2933_v45  ;;  %v3061_v7 = vcombine.low %v2996_v3, %v3012_v54  ;;  %v3236_v16 = vrot.slane %v4758_v61, %v5790_v47  ;;  %v4760_v57 = vcombine.high %v7384_v39, %v7383_v27 }
 0x2a4   : > { %5093 = vrot.lane.b32.xlu0 %v5092_v28, %s5372_s8  ;;  %v3165_v32 = vcombine.low %v3100_v1, %v3116_v44  ;;  %v3197_v19 = vcombine.low %v3132_v18, %v3148_v8  ;;  %v4762_v40 = vcombine.high %v7386_v24, %v7385_v4  ;;  %v4764_v50 = vcombine.high %v7388_v23, %v7387_v49 }
 0x2a5   : > { %v3069_v25 = vrot.slane %v3061_v7, %v5865_v5  ;;  %v3252_v15 = vrot.slane %v4760_v57, %v5790_v47  ;;  %v2946_v36 = vcombine.high %v2901_v51, %v2933_v45  ;;  %v2894_v33 = vcombine.high %v6835_v58, %v2844_v63 }
 0x2a6   : > { %v3173_v38 = vrot.slane %v3165_v32, %v5865_v5  ;;  %v3205_v27 = vrot.slane %v3197_v19, %v5865_v5  ;;  %v3268_v39 = vrot.slane %v4762_v40, %v5790_v47  ;;  %v3284_v28 = vrot.slane %v4764_v50, %v5790_v47 }
 0x2a7   : > { %v3081_v22 = vcombine.low %v3037_v62, %v3069_v25  ;;  %v3301_v4 = vcombine.low %v3236_v16, %v3252_v15  ;;  %v3082_v24 = vcombine.high %v3037_v62, %v3069_v25  ;;  %v2908_v49 = vrot.slane %v2894_v33, %v5865_v5  ;;  %v7390_v33 = vld [vmem:[#allocation46_spill] sm:$0xff] }
 0x2a8   : > { %5098 = vrot.lane.b32.xlu0 %v5097_v9, %s5374_s24  ;;  %v3217_v23 = vcombine.low %v3173_v38, %v3205_v27  ;;  %v3333_v10 = vcombine.low %v3268_v39, %v3284_v28  ;;  %v3218_v51 = vcombine.high %v3173_v38, %v3205_v27  ;;  %v2926_v58 = vcombine.high %v6856_v29, %v2876_v60  ;;  %v7391_v27 = vld [vmem:[#allocation50_spill] sm:$0xff] }
 0x2a9   : > { %v5102_v63 = vpack.i.bf16 %v3081_v22, %v2945_v17  ;;  %v3309_v31 = vrot.slane %v3301_v4, %v5865_v5  ;;  %v5107_v43 = vpack.i.bf16 %v3082_v24, %v2946_v36  ;;  %v3030_v48 = vcombine.high %v2964_v2, %v2980_v46  ;;  %v7389_v36 = vld [vmem:[#allocation49_spill] sm:$0xff]  ;;  %v7393_v24 = vld [vmem:[#allocation56_spill] sm:$0xff] }
 0x2aa   : > { %v3341_v13 = vrot.slane %v3333_v10, %v5865_v5  ;;  %v2940_v35 = vrot.slane %v2926_v58, %v5865_v5  ;;  %v3062_v45 = vcombine.high %v2996_v3, %v3012_v54  ;;  %v3166_v62 = vcombine.high %v3100_v1, %v3116_v44  ;;  %v7395_v10 = vld [vmem:[#allocation58_spill] sm:$0xff] }
 0x2ab   : > { %5103 = vrot.lane.b32.xlu1 %v5102_v63, %s5375_s4  ;;  %v3044_v9 = vrot.slane %v3030_v48, %v5865_v5  ;;  %v3198_v61 = vcombine.high %v3132_v18, %v3148_v8  ;;  %v3302_v7 = vcombine.high %v3236_v16, %v3252_v15  ;;  %v3334_v57 = vcombine.high %v3268_v39, %v3284_v28  ;;  %v7392_v39 = vld [vmem:[#allocation48_spill] sm:$0xff]  ;;  %v7397_v48 = vld [vmem:[#allocation19_spill] sm:$0xff] }
 0x2ac   : > { %v3353_v29 = vcombine.low %v3309_v31, %v3341_v13  ;;  %v3354_v60 = vcombine.high %v3309_v31, %v3341_v13  ;;  %v2947_v17 = vcombine.low %v2908_v49, %v2940_v35  ;;  %v3076_v32 = vrot.slane %v3062_v45, %v5865_v5  ;;  %v7398_v13 = vld [vmem:[#allocation15_spill] sm:$0xff] }
 0x2ad   : > { %v3180_v2 = vrot.slane %v3166_v62, %v5865_v5  ;;  %v3212_v46 = vrot.slane %v3198_v61, %v5865_v5  ;;  %v3316_v3 = vrot.slane %v3302_v7, %v5865_v5  ;;  %v3348_v54 = vrot.slane %v3334_v57, %v5865_v5  ;;  %v7400_v61 = vld [vmem:[#allocation17_spill] sm:$0xff]  ;;  %v7401_v57 = vld [vmem:[#allocation43_spill] sm:$0xff] }
 0x2ae   : > { %v5122_v1 = vpack.i.bf16 %v3353_v29, %v3217_v23  ;;  %v5127_v44 = vpack.i.bf16 %v3354_v60, %v3218_v51  ;;  %v3083_v19 = vcombine.low %v3044_v9, %v3076_v32  ;;  %v2948_v40 = vcombine.high %v2908_v49, %v2940_v35  ;;  %v7394_v49 = vld [vmem:[#allocation52_spill] sm:$0xff]  ;;  %v7396_v51 = vld [vmem:[#allocation54_spill] sm:$0xff]  ;;  %v7402_v29 = vld [vmem:[#allocation39_spill] sm:$0xff] }
 0x2af   : > { %5108 = vrot.lane.b32.xlu1 %v5107_v43, %s5376_s23  ;;  %v3219_v18 = vcombine.low %v3180_v2, %v3212_v46  ;;  %v3355_v8 = vcombine.low %v3316_v3, %v3348_v54  ;;  %v3084_v16 = vcombine.high %v3044_v9, %v3076_v32  ;;  %v3220_v50 = vcombine.high %v3180_v2, %v3212_v46  ;;  %v7399_v9 = vld [vmem:[#allocation37_spill] sm:$0xff] }
 0x2b0   : > { %5123 = vrot.lane.b32.xlu0 %v5122_v1, %s5375_s4  ;;  %v5112_v25 = vpack.i.bf16 %v3083_v19, %v2947_v17  ;;  %v3356_v15 = vcombine.high %v3316_v3, %v3348_v54  ;;  %v4766_v38 = vcombine.low %v7390_v33, %v7389_v36  ;;  %v4768_v28 = vcombine.low %v7392_v39, %v7391_v27  ;;  %v7403_v2 = vld [vmem:[#allocation45_spill] sm:$0xff] }
 0x2b1   : > { %v5132_v22 = vpack.i.bf16 %v3355_v8, %v3219_v18  ;;  %v5117_v4 = vpack.i.bf16 %v3084_v16, %v2948_v40  ;;  %v4770_v23 = vcombine.low %v7394_v49, %v7393_v24  ;;  %v4772_v58 = vcombine.low %v7396_v51, %v7395_v10  ;;  %v7404_v46 = vld [vmem:[#allocation41_spill] sm:$0xff] }
 0x2b2   : > { %v5137_v63 = vpack.i.bf16 %v3356_v15, %v3220_v50  ;;  %v6933_v31 = vrot.slane %v4766_v38, %v5790_v47  ;;  %v6936_v43 = vrot.slane %v4768_v28, %v5790_v47  ;;  %v4774_v35 = vcombine.low %v7398_v13, %v7397_v48 }
 0x2b3   : > { %5113 = vrot.lane.b32.xlu1 %v5112_v25, %s5377_s0  ;;  %v6942_v45 = vrot.slane %v4770_v23, %v5790_v47  ;;  %v6945_v62 = vrot.slane %v4772_v58, %v5790_v47  ;;  %v4776_v7 = vcombine.low %v7400_v61, %v7399_v9  ;;  %v4778_v60 = vcombine.low %v7402_v29, %v7401_v57 }
 0x2b4   : > { %5128 = vrot.lane.b32.xlu0 %v5127_v44, %s5376_s23  ;;  %v3437_v17 = vcombine.low %v6933_v31, %v6936_v43  ;;  %v6955_v32 = vrot.slane %v4774_v35, %v5790_v47  ;;  %v4780_v3 = vcombine.low %v7404_v46, %v7403_v2  ;;  %v4782_v54 = vcombine.high %v7390_v33, %v7389_v36 }
 0x2b5   : > { %v3469_v1 = vcombine.low %v6942_v45, %v6945_v62  ;;  %v3524_v19 = vrot.slane %v4776_v7, %v5790_v47  ;;  %v3540_v40 = vrot.slane %v4778_v60, %v5790_v47  ;;  %v4784_v44 = vcombine.high %v7392_v39, %v7391_v27 }
 0x2b6   : > { %v3445_v18 = vrot.slane %v3437_v17, %v5865_v5  ;;  %v3556_v8 = vrot.slane %v4780_v3, %v5790_v47  ;;  %v3644_v16 = vrot.slane %v4782_v54, %v5790_v47  ;;  %v4786_v50 = vcombine.high %v7394_v49, %v7393_v24 }
 0x2b7   : > { %5118 = vrot.lane.b32.xlu1 %v5117_v4, %s5378_s27  ;;  %v3477_v25 = vrot.slane %v3469_v1, %v5865_v5  ;;  %v3573_v15 = vcombine.low %v6955_v32, %v3524_v19  ;;  %v3660_v36 = vrot.slane %v4784_v44, %v5790_v47  ;;  %v4788_v33 = vcombine.high %v7396_v51, %v7395_v10 }
 0x2b8   : > { %5133 = vrot.lane.b32.xlu0 %v5132_v22, %s5377_s0  ;;  %v3605_v38 = vcombine.low %v3540_v40, %v3556_v8  ;;  %v3676_v27 = vrot.slane %v4786_v50, %v5790_v47  ;;  %v4790_v39 = vcombine.high %v7398_v13, %v7397_v48  ;;  %v4792_v28 = vcombine.high %v7400_v61, %v7399_v9 }
 0x2b9   : > { %v3489_v4 = vcombine.low %v3445_v18, %v3477_v25  ;;  %v3581_v24 = vrot.slane %v3573_v15, %v5865_v5  ;;  %v3692_v49 = vrot.slane %v4788_v33, %v5790_v47  ;;  %v3709_v23 = vcombine.low %v3644_v16, %v3660_v36 }
 0x2ba   : > { %v3613_v58 = vrot.slane %v3605_v38, %v5865_v5  ;;  %v3780_v10 = vrot.slane %v4790_v39, %v5790_v47  ;;  %v3796_v22 = vrot.slane %v4792_v28, %v5790_v47  ;;  %v4794_v51 = vcombine.high %v7402_v29, %v7401_v57 }
 0x2bb   : > { %v3717_v48 = vrot.slane %v3709_v23, %v5865_v5  ;;  %v3741_v13 = vcombine.low %v3676_v27, %v3692_v49  ;;  %v4796_v35 = vcombine.high %v7404_v46, %v7403_v2  ;;  %v3490_v9 = vcombine.high %v3445_v18, %v3477_v25 }
 0x2bc   : > { %5138 = vrot.lane.b32.xlu0 %v5137_v63, %s5378_s27  ;;  %v3625_v61 = vcombine.low %v3581_v24, %v3613_v58  ;;  %v3812_v7 = vrot.slane %v4794_v51, %v5790_v47  ;;  %v3845_v60 = vcombine.low %v3780_v10, %v3796_v22  ;;  %v3626_v17 = vcombine.high %v3581_v24, %v3613_v58 }
 0x2bd   : > { %v3749_v3 = vrot.slane %v3741_v13, %v5865_v5  ;;  %v3828_v54 = vrot.slane %v4796_v35, %v5790_v47  ;;  %v3710_v1 = vcombine.high %v3644_v16, %v3660_v36  ;;  %v3742_v57 = vcombine.high %v3676_v27, %v3692_v49 }
 0x2be   : > { %v5142_v29 = vpack.i.bf16 %v3625_v61, %v3489_v4  ;;  %v3853_v44 = vrot.slane %v3845_v60, %v5865_v5  ;;  %v5147_v50 = vpack.i.bf16 %v3626_v17, %v3490_v9  ;;  %v3846_v15 = vcombine.high %v3780_v10, %v3796_v22 }
 0x2bf   : > { %v3761_v2 = vcombine.low %v3717_v48, %v3749_v3  ;;  %v3877_v46 = vcombine.low %v3812_v7, %v3828_v54  ;;  %v3724_v63 = vrot.slane %v3710_v1, %v5865_v5  ;;  %v3756_v18 = vrot.slane %v3742_v57, %v5865_v5 }
 0x2c0   : > { %5143 = vrot.lane.b32.xlu1 %v5142_v29, %s5375_s4  ;;  %v3860_v25 = vrot.slane %v3846_v15, %v5865_v5  ;;  %v3878_v33 = vcombine.high %v3812_v7, %v3828_v54  ;;  %v3438_v47 = vcombine.high %v6933_v31, %v6936_v43  ;;  %v3470_v16 = vcombine.high %v6942_v45, %v6945_v62 }
 0x2c1   : > { %v3885_v36 = vrot.slane %v3877_v46, %v5865_v5  ;;  %v3763_v38 = vcombine.low %v3724_v63, %v3756_v18  ;;  %v3574_v27 = vcombine.high %v6955_v32, %v3524_v19  ;;  %v3606_v39 = vcombine.high %v3540_v40, %v3556_v8  ;;  %v4187_v19 = vld [vmem:[%s5607_s11] sm:$0xff] }
 0x2c2   : > { %v3892_v28 = vrot.slane %v3878_v33, %v5865_v5  ;;  %v3452_v4 = vrot.slane %v3438_v47, %v5865_v5  ;;  %v3484_v24 = vrot.slane %v3470_v16, %v5865_v5  ;;  %v3762_v49 = vcombine.high %v3717_v48, %v3749_v3  ;;  %4897 = vmatprep.mubr.msk.f32.mxu1 %vm4134_vm1, %v4187_v19  ;;  %v7405_v47 = vld [vmem:[#allocation61_spill] sm:$0xff]  ;;  %v7406_v16 = vld [vmem:[#allocation62_spill] sm:$0xff] }
 0x2c3   : > { %v3897_v23 = vcombine.low %v3853_v44, %v3885_v36  ;;  %v3588_v31 = vrot.slane %v3574_v27, %v5865_v5  ;;  %v3620_v43 = vrot.slane %v3606_v39, %v5865_v5  ;;  %v3898_v45 = vcombine.high %v3853_v44, %v3885_v36  ;;  %v7408_v27 = vld [vmem:[#allocation59_spill] sm:$0xff]  ;;  %v7409_v39 = vld [vmem:[#allocation60_spill] sm:$0xff] }
 0x2c4   : > { %5148 = vrot.lane.b32.xlu1 %v5147_v50, %s5376_s23  ;;  %v3899_v62 = vcombine.low %v3860_v25, %v3892_v28  ;;  %v3491_v58 = vcombine.low %v3452_v4, %v3484_v24  ;;  %v3492_v10 = vcombine.high %v3452_v4, %v3484_v24  ;;  %v3764_v32 = vcombine.high %v3724_v63, %v3756_v18 }
 0x2c5   : > { %v5162_v40 = vpack.i.bf16 %v3897_v23, %v3761_v2  ;;  %v3627_v8 = vcombine.low %v3588_v31, %v3620_v43  ;;  %v3628_v22 = vcombine.high %v3588_v31, %v3620_v43  ;;  %v5167_v51 = vpack.i.bf16 %v3898_v45, %v3762_v49 }
 0x2c6   : > { %v5172_v13 = vpack.i.bf16 %v3899_v62, %v3763_v38  ;;  %v3900_v35 = vcombine.high %v3860_v25, %v3892_v28  ;;  %v7407_v36 = vcombine.low %v7405_v47, %v7406_v16  ;;  %v7410_v28 = vcombine.low %v7408_v27, %v7409_v39 }
 0x2c7   : > { %5163 = vrot.lane.b32.xlu0 %v5162_v40, %s5375_s4  ;;  %v5152_v48 = vpack.i.bf16 %v3627_v8, %v3491_v58  ;;  %v5157_v9 = vpack.i.bf16 %v3628_v22, %v3492_v10 }
 0x2c8   : > { %v5177_v5 = vpack.i.bf16 %v3900_v35, %v3764_v32 }
 0x2c9   : > { %5153 = vrot.lane.b32.xlu1 %v5152_v48, %s5377_s0 }
 0x2cb   : > { %5173 = vrot.lane.b32.xlu0 %v5172_v13, %s5377_s0 }
 0x2cd   : > { %5158 = vrot.lane.b32.xlu1 %v5157_v9, %s5378_s27 }
 0x2d1   : > { %5168 = vrot.lane.b32.xlu1 %v5167_v51, %s5376_s23 }
 0x2d5   : > { %5178 = vrot.lane.b32.xlu1 %v5177_v5, %s5378_s27 }
 0x2ef   : > { %v5044_v61 = vpop.permute.xlu0 %5043  ;;  %v5049_v17 = vpop.permute.xlu1 %5048 }
 0x2f0   : > { %v5046_v46 = vunpack.i.h.bf16 %v5044_v61  ;;  %v5045_v63 = vunpack.i.l.bf16 %v5044_v61  ;;  %v5051_v18 = vunpack.i.h.bf16 %v5049_v17  ;;  %v5050_v25 = vunpack.i.l.bf16 %v5049_v17 }
 0x2f2   : > { %v4127_v38 = vsel %vm4125_vm2, %v7407_v36, %v5046_v46  ;;  %v4126_v4 = vsel %vm4125_vm2, %v7410_v28, %v5045_v63 }
 0x2f3   : > { %v4135_v58 = vsel %vm4134_vm1, %v4126_v4, %v5050_v25  ;;  %v4136_v10 = vsel %vm4134_vm1, %v4127_v38, %v5051_v18 }
 0x2f4   : > { %v5054_v7 = vpop.permute.xlu0 %5053 }
 0x2f5   : > { %v5056_v24 = vunpack.i.h.bf16 %v5054_v7  ;;  %v5055_v49 = vunpack.i.l.bf16 %v5054_v7 }
 0x2f7   : > { %v4144_v8 = vsel %vm4143_vm3, %v4135_v58, %v5055_v49  ;;  %v4145_v22 = vsel %vm4143_vm3, %v4136_v10, %v5056_v24 }
 0x2fb   : > { %v7023_v54 = vpop.permute.xlu1 %5073 }
 0x2ff   : > { %v7029_v29 = vpop.permute.xlu1 %5078 }
 0x303   : > { %v7033_v50 = vpop.permute.xlu1 %5083 }
 0x306   : > { %v5059_v60 = vpop.permute.xlu0 %5058 }
 0x307   : > { %v5061_v31 = vunpack.i.h.bf16 %v5059_v60  ;;  %v5060_v43 = vunpack.i.l.bf16 %v5059_v60 }
 0x309   : > { %v4129_v48 = vsel %vm4125_vm2, %v3349_v14, %v5061_v31  ;;  %v4128_v9 = vsel %vm4125_vm2, %v3213_v53, %v5060_v43 }
 0x30a   : > { %v5064_v3 = vpop.permute.xlu0 %5063 }
 0x30b   : > { %v5066_v45 = vunpack.i.h.bf16 %v5064_v3  ;;  %v5065_v62 = vunpack.i.l.bf16 %v5064_v3 }
 0x30d   : > { %v4137_v7 = vsel %vm4134_vm1, %v4128_v9, %v5065_v62  ;;  %v4138_v60 = vsel %vm4134_vm1, %v4129_v48, %v5066_v45  ;;  %v4805_v48 = vld [vmem:[%s5607_s11 + $0x20] sm:$0xff]  ;;  %v5076_v9 = vunpack.i.h.bf16 %v7023_v54 }
 0x30e   : > { %v7025_v1 = vpop.permute.xlu0 %5068 }
 0x30f   : > { %v5071_v17 = vunpack.i.h.bf16 %v7025_v1  ;;  %v5070_v3 = vunpack.i.l.bf16 %v7025_v1 }
 0x311   : > { %v4146_v39 = vsel %vm4143_vm3, %v4137_v7, %v5070_v3  ;;  %v4147_v28 = vsel %vm4143_vm3, %v4138_v60, %v5071_v17  ;;  %v5080_v7 = vunpack.i.l.bf16 %v7029_v29  ;;  %v5086_v60 = vunpack.i.h.bf16 %v7033_v50 }
 0x312   : > { %v7027_v57 = vpop.permute.xlu0 %5088  ;;  %v5085_v17 = vunpack.i.l.bf16 %v7033_v50  ;;  %v4131_v3 = vsel %vm4125_vm2, %v3621_v37, %v5076_v9 }
 0x313   : > { %v5090_v52 = vunpack.i.l.bf16 %v7027_v57 }
 0x316   : > { %v7031_v44 = vpop.permute.xlu0 %5093 }
 0x317   : > { %v5096_v55 = vunpack.i.h.bf16 %v7031_v44 }
 0x31a   : > { %v7035_v15 = vpop.permute.xlu0 %5098 }
 0x31d   : > { %v5104_v2 = vpop.permute.xlu1 %5103 }
 0x31e   : > { %v5106_v32 = vunpack.i.h.bf16 %v5104_v2  ;;  %v5105_v19 = vunpack.i.l.bf16 %v5104_v2 }
 0x320   : > { %v4152_v2 = vsel %vm283_vm0, %v4144_v8, %v5105_v19  ;;  %v4153_v59 = vsel %vm283_vm0, %v4145_v22, %v5106_v32  ;;  %v4188_v32 = vld [vmem:[%s5607_s11 + $0x8] sm:$0xff]  ;;  %v4799_v8 = vld [vmem:[%s5607_s11 + $0x10] sm:$0xff] }
 0x321   : > { %v5109_v33 = vpop.permute.xlu1 %5108 }
 0x322   : > { %v5124_v23 = vpop.permute.xlu0 %5123  ;;  %v5111_v51 = vunpack.i.h.bf16 %v5109_v33  ;;  %v5110_v13 = vunpack.i.l.bf16 %v5109_v33 }
 0x323   : > { %v5126_v12 = vunpack.i.h.bf16 %v5124_v23  ;;  %v5125_v14 = vunpack.i.l.bf16 %v5124_v23 }
 0x324   : > { %v4161_v42 = vsel %vm4160_vm4, %v4152_v2, %v5110_v13  ;;  %v4162_v20 = vsel %vm4160_vm4, %v4153_v59, %v5111_v51  ;;  %v4800_v13 = vld [vmem:[%s5607_s11 + $0x18] sm:$0xff] }
 0x325   : > { %v5114_v40 = vpop.permute.xlu1 %5113  ;;  %v4154_v24 = vsel %vm283_vm0, %v4146_v39, %v5125_v14  ;;  %v4155_v49 = vsel %vm283_vm0, %v4147_v28, %v5126_v12  ;;  %v4132_v28 = vsel %vm4125_vm2, %v3757_v0, %v5090_v52 }
 0x326   : > { %v5129_v35 = vpop.permute.xlu0 %5128  ;;  %v5116_v5 = vunpack.i.h.bf16 %v5114_v40  ;;  %v5115_v61 = vunpack.i.l.bf16 %v5114_v40 }
 0x327   : > { %v5131_v47 = vunpack.i.h.bf16 %v5129_v35  ;;  %v5130_v1 = vunpack.i.l.bf16 %v5129_v35 }
 0x328   : > { %v4170_v25 = vsel %vm4169_vm5, %v4161_v42, %v5115_v61  ;;  %v4171_v33 = vsel %vm4169_vm5, %v4162_v20, %v5116_v5  ;;  %v5075_v5 = vunpack.i.l.bf16 %v7023_v54  ;;  %v5081_v61 = vunpack.i.h.bf16 %v7029_v29 }
 0x329   : > { %v5119_v46 = vpop.permute.xlu1 %5118  ;;  %v4163_v31 = vsel %vm4160_vm4, %v4154_v24, %v5130_v1  ;;  %v4164_v43 = vsel %vm4160_vm4, %v4155_v49, %v5131_v47  ;;  %v5091_v20 = vunpack.i.h.bf16 %v7027_v57 }
 0x32a   : > { %v5121_v53 = vunpack.i.h.bf16 %v5119_v46  ;;  %v5120_v63 = vunpack.i.l.bf16 %v5119_v46  ;;  %v5134_v18 = vpop.permute.xlu0 %5133  ;;  %v4130_v54 = vsel %vm4125_vm2, %v3485_v30, %v5075_v5  ;;  %v4140_v14 = vsel %vm4134_vm1, %v4131_v3, %v5081_v61  ;;  %v4812_v61 = vld [vmem:[%s5607_s11 + $0x38] sm:$0xff] }
 0x32b   : > { %v5136_v16 = vunpack.i.h.bf16 %v5134_v18  ;;  %v5135_v36 = vunpack.i.l.bf16 %v5134_v18  ;;  %v4139_v12 = vsel %vm4134_vm1, %v4130_v54, %v5080_v7  ;;  %v4149_v26 = vsel %vm4143_vm3, %v4140_v14, %v5086_v60 }
 0x32c   : > { %v4179_v38 = vsel %vm4178_vm6, %v4170_v25, %v5120_v63  ;;  %v4180_v27 = vsel %vm4178_vm6, %v4171_v33, %v5121_v53  ;;  %v4148_v42 = vsel %vm4143_vm3, %v4139_v12, %v5085_v17  ;;  %v5095_v30 = vunpack.i.l.bf16 %v7031_v44 }
 0x32d   : > { %v4929_v4 = vpack.c.bf16 %v4180_v27, %v4179_v38  ;;  %v4172_v58 = vsel %vm4169_vm5, %v4163_v31, %v5135_v36  ;;  %v4173_v10 = vsel %vm4169_vm5, %v4164_v43, %v5136_v16  ;;  %v5101_v63 = vunpack.i.h.bf16 %v7035_v15 }
 0x32e   : > { %v5139_v23 = vpop.permute.xlu0 %5138  ;;  %v5100_v18 = vunpack.i.l.bf16 %v7035_v15  ;;  %v4133_v15 = vsel %vm4125_vm2, %v3893_v21, %v5091_v20  ;;  %v4141_v49 = vsel %vm4134_vm1, %v4132_v28, %v5095_v30 }
 0x32f   : > { %v5141_v45 = vunpack.i.h.bf16 %v5139_v23  ;;  %v5140_v62 = vunpack.i.l.bf16 %v5139_v23  ;;  %4930 = vmatprep.subr.bf16.mxu1 %v4929_v4  ;;  %v4142_v23 = vsel %vm4134_vm1, %v4133_v15, %v5096_v55 }
 0x330   : > { %4932 = vmatpush3.bf16.msra.mxu1 %v4929_v4  ;;  %v4150_v11 = vsel %vm4143_vm3, %v4141_v49, %v5100_v18  ;;  %v4151_v41 = vsel %vm4143_vm3, %v4142_v23, %v5101_v63 }
 0x331   : > { %v4181_v19 = vsel %vm4178_vm6, %v4172_v58, %v5140_v62  ;;  %v4182_v40 = vsel %vm4178_vm6, %v4173_v10, %v5141_v45  ;;  %v4806_v10 = vld [vmem:[%s5607_s11 + $0x28] sm:$0xff] }
 0x332   : > { %v5144_v22 = vpop.permute.xlu1 %5143  ;;  %v4933_v51 = vpack.c.bf16 %v4182_v40, %v4181_v19 }
 0x333   : > { %4898 = vmatmul.mubr.msk.f32.vlgmr.msra.gmra.mrb[4].mxu1 %vm4134_vm1, %v4188_v32  ;;  %v5146_v2 = vunpack.i.h.bf16 %v5144_v22  ;;  %v5145_v29 = vunpack.i.l.bf16 %v5144_v22 }
 0x334   : > { %4934 = vmatprep.subr.bf16.mxu1 %v4933_v51  ;;  %4904 = vmatprep.mubr.msk.f32.mxu1 %vm4134_vm1, %v4799_v8  ;;  %v4811_v8 = vld [vmem:[%s5607_s11 + $0x30] sm:$0xff] }
 0x335   : > { %4936 = vmatpush3.bf16.msra.mxu1 %v4933_v51  ;;  %v4157_v25 = vsel %vm283_vm0, %v4149_v26, %v5146_v2  ;;  %v4156_v33 = vsel %vm283_vm0, %v4148_v42, %v5145_v29 }
 0x336   : > { %v5149_v35 = vpop.permute.xlu1 %5148 }
 0x337   : > { %v5151_v50 = vunpack.i.h.bf16 %v5149_v35  ;;  %v5150_v46 = vunpack.i.l.bf16 %v5149_v35 }
 0x338   : > { %4905 = vmatmul.mubr.msk.f32.vlgmr.msra.gmra.mrb[6].mxu1 %vm4134_vm1, %v4800_v13 }
 0x339   : > { %4911 = vmatprep.mubr.msk.f32.mxu1 %vm4134_vm1, %v4805_v48  ;;  %v5164_v53 = vpop.permute.xlu0 %5163  ;;  %v4165_v1 = vsel %vm4160_vm4, %v4156_v33, %v5150_v46  ;;  %v4166_v16 = vsel %vm4160_vm4, %v4157_v25, %v5151_v50 }
 0x33a   : > { %v5166_v38 = vunpack.i.h.bf16 %v5164_v53  ;;  %v5165_v27 = vunpack.i.l.bf16 %v5164_v53 }
 0x33b   : > { %v5154_v59 = vpop.permute.xlu1 %5153 }
 0x33c   : > { %v5156_v34 = vunpack.i.h.bf16 %v5154_v59  ;;  %v5155_v37 = vunpack.i.l.bf16 %v5154_v59  ;;  %v4158_v0 = vsel %vm283_vm0, %v4150_v11, %v5165_v27  ;;  %v4159_v45 = vsel %vm283_vm0, %v4151_v41, %v5166_v38 }
 0x33d   : > { %v5174_v21 = vpop.permute.xlu0 %5173 }
 0x33e   : > { %v4174_v44 = vsel %vm4169_vm5, %v4165_v1, %v5155_v37  ;;  %v4175_v39 = vsel %vm4169_vm5, %v4166_v16, %v5156_v34  ;;  %v5176_v32 = vunpack.i.h.bf16 %v5174_v21  ;;  %v5175_v19 = vunpack.i.l.bf16 %v5174_v21 }
 0x33f   : > { %v5159_v47 = vpop.permute.xlu1 %5158 }
 0x340   : > { %v5161_v36 = vunpack.i.h.bf16 %v5159_v47  ;;  %v5160_v57 = vunpack.i.l.bf16 %v5159_v47 }
 0x342   : > { %v4183_v4 = vsel %vm4178_vm6, %v4174_v44, %v5160_v57  ;;  %v4184_v24 = vsel %vm4178_vm6, %v4175_v39, %v5161_v36 }
 0x343   : > { %v5169_v31 = vpop.permute.xlu1 %5168  ;;  %v4937_v43 = vpack.c.bf16 %v4184_v24, %v4183_v4 }
 0x344   : > { %v5171_v56 = vunpack.i.h.bf16 %v5169_v31  ;;  %v5170_v6 = vunpack.i.l.bf16 %v5169_v31 }
 0x345   : > { %4938 = vmatprep.subr.bf16.mxu1 %v4937_v43 }
 0x346   : > { %v4167_v62 = vsel %vm4160_vm4, %v4158_v0, %v5170_v6  ;;  %v4168_v58 = vsel %vm4160_vm4, %v4159_v45, %v5171_v56  ;;  %4940 = vmatpush3.bf16.msra.mxu1 %v4937_v43 }
 0x347   : > { %v5179_v40 = vpop.permute.xlu1 %5178  ;;  %v4176_v13 = vsel %vm4169_vm5, %v4167_v62, %v5175_v19  ;;  %v4177_v35 = vsel %vm4169_vm5, %v4168_v58, %v5176_v32 }
 0x348   : > { %v5181_v22 = vunpack.i.h.bf16 %v5179_v40  ;;  %v5180_v51 = vunpack.i.l.bf16 %v5179_v40 }
 0x349   : > { %4912 = vmatmul.mubr.msk.f32.vlgmr.msra.gmra.mrb[8].mxu1 %vm4134_vm1, %v4806_v10 }
 0x34a   : > { %v4185_v48 = vsel %vm4178_vm6, %v4176_v13, %v5180_v51  ;;  %v4186_v9 = vsel %vm4178_vm6, %v4177_v35, %v5181_v22  ;;  %4918 = vmatprep.mubr.msk.f32.mxu1 %vm4134_vm1, %v4811_v8 }
 0x34b   : > { %v4941_v5 = vpack.c.bf16 %v4186_v9, %v4185_v48 }
 0x34d   : > { %4942 = vmatprep.subr.bf16.mxu1 %v4941_v5 }
 0x34e   : > { %4944 = vmatpush3.bf16.msra.mxu1 %v4941_v5 }
 0x351   : > { %4919 = vmatmul.mubr.msk.f32.vlgmr.msra.gmra.mrb[10].mxu1 %vm4134_vm1, %v4812_v61 }
 0x406   : > { %v4899_v7 = vpop.f32.mrb[4].mxu1 }
 0x407   : > { %4272 = vst.msk [vmem:[%s261_s7 + $0x8] sm:$0xff] %vm4270_vm7, %v4899_v7  ;;  %v4261_v60 = vpop.f32.mrb[5].mxu1 }
 0x408   : > { %4271 = vst.msk [vmem:[%s261_s7] sm:$0xff] %vm4270_vm7, %v4261_v60 }
 0x40b   : > { %v4906_v17 = vpop.f32.mrb[6].mxu1 }
 0x40c   : > { %4804 = vst.msk [vmem:[%s261_s7 + $0x18] sm:$0xff] %vm4270_vm7, %v4906_v17  ;;  %v4348_v3 = vpop.f32.mrb[7].mxu1 }
 0x40d   : > { %4803 = vst.msk [vmem:[%s261_s7 + $0x10] sm:$0xff] %vm4270_vm7, %v4348_v3 }
 0x41c   : > { %v4913_v54 = vpop.f32.mrb[8].mxu1 }
 0x41d   : > { %4810 = vst.msk [vmem:[%s261_s7 + $0x28] sm:$0xff] %vm4270_vm7, %v4913_v54  ;;  %v4435_v2 = vpop.f32.mrb[9].mxu1 }
 0x41e   : > { %4809 = vst.msk [vmem:[%s261_s7 + $0x20] sm:$0xff] %vm4270_vm7, %v4435_v2 }
 0x424   : > { %v4920_v29 = vpop.f32.mrb[10].mxu1 }
 0x425   : > { %4816 = vst.msk [vmem:[%s261_s7 + $0x38] sm:$0xff] %vm4270_vm7, %v4920_v29  ;;  %v4522_v59 = vpop.f32.mrb[11].mxu1 }
 0x426   : > { %4815 = vst.msk [vmem:[%s261_s7 + $0x30] sm:$0xff] %vm4270_vm7, %v4522_v59 }
 0x427   : > { %5283 = shalt.err (!%p5280_p8)
}
 0x428   : > { %s5284_s20 = scalar_lea.hbm %s7159_s2, 1024  ;;  %s5288_s24 = scalar_lea.hbm %s7214_s3, 2048 }
 0x429   : > { %p5285_p11 = scmp.ne.s32.totalorder %s7159_s2, %s5284_s20  ;;  %p5289_p6 = scmp.lt.u32.totalorder %s7159_s2, %s7214_s3 }
 0x42a   : > { %p5290_p13 = scmp.lt.u32.totalorder %s5288_s24, %s5284_s20  ;;  %p5292_p5 = scmp.lt.u32.totalorder %s5284_s20, %s7159_s2 }
 0x42b   : > { %p5286_p12 = pnand %p5285_p11, %p5496_p10 }
 0x42c   : > { %p5291_p0 = por %p5290_p13, %p5289_p6 }
 0x42d   : > { %p5287_p3 = pneg %p5286_p12 }
 0x42e   : > { %p5293_p9 = por %p5292_p5, %p5291_p0 }
 0x430   : > { %p5294_p1 = pnand %p5293_p9, %p5287_p3 }
 0x432   : > { %5297 = shalt.err (!%p5294_p1)
}
 0x433   : > { %s5380_s0 = smov 128  }
 0x434   : > { %4957 = dma.vmem_to_hbm [thread:$0]  (%p5496_p10), %s7154_s19, 1024, %s7159_s2, %s4535_s22, %s5380_s0, %s5380_s0, %s5373_s10  }
 0x435 PF: > { %s4565_s27 = sand.u32 1, %s5340_s12   ;;  %p7411_p2 = scmp.ne.s32.totalorder %s7279_s21, 0 }
 0x436   : > { %p7412_p7 = scmp.ge.s32.totalorder %s5360_s17, 2  ;;  %s4566_s7 = scalar_lea.sflag [#allocation4], %s4565_s27 }
 0x438   : > { %p4971_p4 = pnand %p7412_p7, %p7411_p2 }
 0x43a   : > { %5335 = dma.done.wait (!%p4971_p4), %s4566_s7, 1024  }
 0x43b   : > { %5337 = vsyncadd (!%p4971_p4), %s4566_s7, 4294966272  ;;  %s22_s17 = sadd.s32 1, %s5360_s17   ;;  %s7413_s25 = sld [smem:[#allocation13_spill]] }
 0x43c   : > { %p19_p8 = scmp.ge.s32.totalorder %s22_s17, 4   ;;  %s7414_s12 = smov %s5344_s13 }
 0x43d   : > { %s7415_s13 = smov %s5348_s14  ;;  %s7416_s14 = smov %s5508_s29 }
 0x43e   : > { %s7417_s15 = smov %s5356_s16  ;;  %21 = sbr.rel (!%p19_p8) target bundleno = 11 (0xb), region = 100 }
 0x441   : > { %s7418_s16 = smov %s7413_s25 }
 0x445   :  { %4571 = vsyncpa [#allocation3], 1 }
 0x446   :  { %4573 = vsyncpa [#allocation3 + $0x1], 1 }
 0x447   :  { %4574 = vsyncpa [#allocation6], 1 }
 0x448   :  { %4576 = vsyncpa [#allocation6 + $0x1], 1 }
 0x449   :  { %4577 = vsyncpa [#allocation4], 1 }
 0x44a   :  { %4579 = vsyncpa [#allocation4 + $0x1], 1 }

</bundles_post_ra>
